<compile_context>
chip_gen: v6e
topology: v6e:2x2x1
jax: 0.10.0
libtpu: 0.0.40
codegen_flags: <defaults>
</compile_context>

<pallas_src>
import functools

import jax
import jax.numpy as jnp
from jax.experimental import pallas as pl
from jax.experimental.pallas import tpu as pltpu

ALPHA = 1.0  # IDEC fixes self.alpha = 1.0 in __init__
_LANE = 128


def _round_up(a, m):
    return ((a + m - 1) // m) * m


def _vmem_capacity_bytes():
    """Physical per-core VMEM; conservative 64 MiB (v7x) fallback."""
    try:
        info = pltpu.get_tpu_info()
        return int(getattr(info, "vmem_capacity_bytes", 64 << 20))
    except Exception:
        return 64 << 20


def _pick_tb(B, vmem_cap):
    """Batch-tile selection: taller tiles on 128 MiB parts, even grid split on v7x."""
    b8 = _round_up(max(B, 8), 8)
    if b8 <= 256:
        return b8                      # single / tiny tile; grid overhead dominates
    if vmem_cap >= (100 << 20):        # v5e / v6e: 128 MiB VMEM
        return 512
    # v7x (64 MiB): smaller tile; prefer an even number of grid steps so the
    # "parallel" batch axis shards evenly across the two TensorCores.
    for cand in (256, 384, 320, 192, 128):
        if pl.cdiv(b8, cand) % 2 == 0:
            return cand
    return 256


# --------------------------------------------------------------------------- kernel
def idec_kernel(x_ref,
                w_e1, b_e1, w_e2, b_e2, w_e3, b_e3, w_z, b_z,
                w_d1, b_d1, w_d2, b_d2, w_d3, b_d3, w_xb, b_xb,
                clusters_t_ref, c2_ref,
                xbar_ref, z_ref, q_ref,
                *, n_clusters, compute_dtype):
    f32 = jnp.float32

    def dense(h, w_ref, b_ref, relu=True):
        # MXU matmul in compute_dtype (bf16 fast path), f32 accumulate;
        # bias-add / ReLU stay f32 on the VPU.
        y = jnp.dot(h.astype(compute_dtype), w_ref[...],
                    preferred_element_type=f32) + b_ref[...]
        return jnp.maximum(y, 0.0) if relu else y

    x = x_ref[...]

    # ---- AE encoder ----
    h1 = dense(x, w_e1, b_e1)
    h2 = dense(h1, w_e2, b_e2)
    h3 = dense(h2, w_e3, b_e3)
    # z's padded columns are exact zeros (zero-padded w_z/b_z), so the store is
    # lane-dense and the padded lanes never perturb the Student-t distance.
    z = dense(h3, w_z, b_z, relu=False)                      # f32 (TB, n_z_p)

    # ---- AE decoder ----
    d1 = dense(z, w_d1, b_d1)
    d2 = dense(d1, w_d2, b_d2)
    d3 = dense(d2, w_d3, b_d3)
    xbar = dense(d3, w_xb, b_xb, relu=False)

    # ---- Student-t soft assignment (all f32: tiny dot, avoids bf16 cancellation) ----
    ct = clusters_t_ref[...]                                 # (n_z_p, K_p) f32
    z2 = jnp.sum(z * z, axis=1, keepdims=True)               # (TB, 1)
    c2 = c2_ref[...]                                         # (1, K_p) precomputed
    zc = jnp.dot(z, ct, preferred_element_type=f32)          # (TB, K_p) f32 MXU
    dist2 = jnp.maximum(z2 + c2 - 2.0 * zc, 0.0)             # cancellation guard

    # Inner divide -> EUP approx reciprocal (renormalized below, so bias cancels).
    q = pl.reciprocal(1.0 + dist2 * (1.0 / ALPHA), approx=True)
    if ALPHA != 1.0:  # exponent is exactly 1 when alpha == 1 -> skip the pow
        q = q ** ((ALPHA + 1.0) / 2.0)

    k_p = q_ref.shape[1]
    if n_clusters != k_p:
        # Zero the padded cluster columns before normalizing.
        lane = jax.lax.broadcasted_iota(jnp.int32, q.shape, 1)
        q = jnp.where(lane < n_clusters, q, 0.0)
    # Exact divide for the final normalization: rows of q sum to 1 (feeds KL downstream).
    q = q / jnp.sum(q, axis=1, keepdims=True)

    xbar_ref[...] = xbar.astype(xbar_ref.dtype)
    z_ref[...] = z.astype(z_ref.dtype)
    q_ref[...] = q                                           # single lane-dense store


# --------------------------------------------------------------- one-time param prep
def prepare_params(params, n_input, n_z, n_clusters, *, compute_dtype=jnp.bfloat16):
    """Pad every feature dim to x128 and cast weights to compute_dtype ONCE.

    Returns (weight_args, meta). Call once per parameter set and reuse; keeps the
    per-call forward free of XLA pad/convert traffic.
    """
    (w_e1, b_e1, w_e2, b_e2, w_e3, b_e3, w_z, b_z,
     w_d1, b_d1, w_d2, b_d2, w_d3, b_d3, w_xb, b_xb, clusters_t) = params

    def pad_w(w):
        fin, fout = w.shape
        return jnp.pad(w, ((0, _round_up(fin, _LANE) - fin),
                           (0, _round_up(fout, _LANE) - fout)))

    def pad_b(b):
        fout = b.shape[1]
        return jnp.pad(b, ((0, 0), (0, _round_up(fout, _LANE) - fout)))

    cast_w = lambda w: pad_w(w).astype(compute_dtype)   # MXU operands
    keep_b = lambda b: pad_b(b).astype(jnp.float32)     # bias-add stays f32

    n_z_p = _round_up(n_z, _LANE)
    k_p = _round_up(n_clusters, _LANE)
    ct_p = jnp.pad(clusters_t.astype(jnp.float32),
                   ((0, n_z_p - n_z), (0, k_p - n_clusters)))        # (n_z_p, K_p) f32
    c2 = jnp.sum(ct_p * ct_p, axis=0, keepdims=True)                 # (1, K_p) f32

    weight_args = (
        cast_w(w_e1), keep_b(b_e1), cast_w(w_e2), keep_b(b_e2),
        cast_w(w_e3), keep_b(b_e3), cast_w(w_z), keep_b(b_z),
        cast_w(w_d1), keep_b(b_d1), cast_w(w_d2), keep_b(b_d2),
        cast_w(w_d3), keep_b(b_d3), cast_w(w_xb), keep_b(b_xb),
        ct_p, c2,
    )
    meta = dict(n_input=n_input, n_z=n_z, n_clusters=n_clusters,
                n_input_p=_round_up(n_input, _LANE), n_z_p=n_z_p, k_p=k_p,
                compute_dtype=compute_dtype)
    return jax.block_until_ready(weight_args), meta


# ------------------------------------------------------------------------- forward
def idec_forward(x, weight_args, meta, *, tb=None, out_dtype=jnp.float32):
    n_input = meta["n_input"]
    n_z = meta["n_z"]
    n_clusters = meta["n_clusters"]
    n_input_p = meta["n_input_p"]
    n_z_p = meta["n_z_p"]
    k_p = meta["k_p"]
    compute_dtype = meta["compute_dtype"]

    B = x.shape[0]
    vmem_cap = _vmem_capacity_bytes()
    if tb is None:
        tb = _pick_tb(B, vmem_cap)
    bp = _round_up(B, tb)

    # Only per-call data movement: pad the activations (batch + input lanes).
    x_p = jnp.pad(x, ((0, bp - B), (0, n_input_p - n_input)))

    # --- VMEM budget: the pipeliner allocates 2 buffers per input even for
    # constant-index params, so count them twice; add double-buffered I/O tiles,
    # live activations, and 4 MiB slack; cap 8 MiB below physical capacity.
    param_bytes = sum(int(a.size) * a.dtype.itemsize for a in weight_args)
    max_w = max([int(a.shape[-1]) for a in weight_args] + [n_input_p, n_z_p, k_p])
    io_bytes = 2 * tb * (2 * n_input_p + n_z_p + k_p) * 4
    act_bytes = 4 * tb * max_w * 4
    need = 2 * param_bytes + io_bytes + act_bytes + (4 << 20)
    cap = max(32 << 20, vmem_cap - (8 << 20))
    vmem_limit = int(min(max(need, 32 << 20), cap))

    kernel = functools.partial(idec_kernel, n_clusters=n_clusters,
                               compute_dtype=compute_dtype)

    batch_spec = lambda width: pl.BlockSpec((tb, width), lambda i: (i, 0))
    in_specs = [batch_spec(n_input_p)]
    # Constant index_map -> params stay VMEM-resident across grid steps.
    in_specs += [pl.BlockSpec(a.shape, lambda i: (0, 0)) for a in weight_args]

    x_bar_p, z_p_out, q_p_out = pl.pallas_call(
        kernel,
        grid=(bp // tb,),
        out_shape=(
            jax.ShapeDtypeStruct((bp, n_input_p), out_dtype),   # x_bar (padded)
            jax.ShapeDtypeStruct((bp, n_z_p), out_dtype),       # z     (padded)
            jax.ShapeDtypeStruct((bp, k_p), jnp.float32),       # q     (padded)
        ),
        in_specs=in_specs,
        out_specs=(batch_spec(n_input_p), batch_spec(n_z_p), batch_spec(k_p)),
        compiler_params=pltpu.CompilerParams(
            dimension_semantics=("parallel",),
            vmem_limit_bytes=vmem_limit,
        ),
    )(x_p, *weight_args)

    x_bar = x_bar_p[:B, :n_input]
    z = z_p_out[:B, :n_z]
    q = q_p_out[:B, :n_clusters]
    return x_bar, q, z


# ----------------------------------------------------------------------- utilities
def init_params(key, n_enc_1, n_enc_2, n_enc_3, n_dec_1, n_dec_2, n_dec_3,
                n_input, n_z, n_clusters):
    """Deterministic synthetic init (xavier-normal-ish). Weights as (in, out);
    biases as (1, out); clusters pre-transposed to (n_z, n_clusters)."""
    dims = [
        (n_input, n_enc_1), (n_enc_1, n_enc_2), (n_enc_2, n_enc_3), (n_enc_3, n_z),
        (n_z, n_dec_1), (n_dec_1, n_dec_2), (n_dec_2, n_dec_3), (n_dec_3, n_input),
    ]
    params = []
    keys = jax.random.split(key, len(dims) + 1)
    for k, (fin, fout) in zip(keys[:-1], dims):
        kw, kb = jax.random.split(k)
        std = (2.0 / (fin + fout)) ** 0.5
        params.append(std * jax.random.normal(kw, (fin, fout), dtype=jnp.float32))
        params.append(0.01 * jax.random.normal(kb, (1, fout), dtype=jnp.float32))
    std_c = (2.0 / (n_clusters + n_z)) ** 0.5
    clusters = std_c * jax.random.normal(keys[-1], (n_clusters, n_z), dtype=jnp.float32)
    params.append(clusters.T)  # (n_z, K)
    return params


def idec_reference(x, params):
    """Pure-JAX reference mirroring the PyTorch forward (f32 throughout)."""
    (w_e1, b_e1, w_e2, b_e2, w_e3, b_e3, w_z, b_z,
     w_d1, b_d1, w_d2, b_d2, w_d3, b_d3, w_xb, b_xb, clusters_t) = params
    relu = jax.nn.relu
    h1 = relu(x @ w_e1 + b_e1)
    h2 = relu(h1 @ w_e2 + b_e2)
    h3 = relu(h2 @ w_e3 + b_e3)
    z = h3 @ w_z + b_z
    d1 = relu(z @ w_d1 + b_d1)
    d2 = relu(d1 @ w_d2 + b_d2)
    d3 = relu(d2 @ w_d3 + b_d3)
    x_bar = d3 @ w_xb + b_xb
    clusters = clusters_t.T  # (K, n_z)
    diff = z[:, None, :] - clusters[None, :, :]
    q = 1.0 / (1.0 + jnp.sum(diff * diff, axis=2) / ALPHA)
    q = q ** ((ALPHA + 1.0) / 2.0)
    q = q / jnp.sum(q, axis=1, keepdims=True)
    return x_bar, q, z


if __name__ == "__main__":
    # Small shapes consistent with the module's constructor arguments.
    B = 8
    n_input, n_z, n_clusters = 32, 8, 4
    n_enc_1, n_enc_2, n_enc_3 = 16, 16, 32
    n_dec_1, n_dec_2, n_dec_3 = 16, 16, 32

    key = jax.random.PRNGKey(0)
    kx, kp = jax.random.split(key)
    x = jax.random.normal(kx, (B, n_input), dtype=jnp.float32)
    params = init_params(kp, n_enc_1, n_enc_2, n_enc_3,
                         n_dec_1, n_dec_2, n_dec_3,
                         n_input, n_z, n_clusters)

    xb_r, q_r, z_r = idec_reference(x, params)

    # f32 MXU path — exact module semantics (tolerance covers approx reciprocal).
    w32, m32 = prepare_params(params, n_input, n_z, n_clusters,
                              compute_dtype=jnp.float32)
    x_bar, q, z = idec_forward(x, w32, m32)
    jax.block_until_ready((x_bar, q, z))
    assert jnp.allclose(x_bar, xb_r, atol=5e-3, rtol=5e-3)
    assert jnp.allclose(q, q_r, atol=5e-3, rtol=5e-3)
    assert jnp.allclose(z, z_r, atol=5e-3, rtol=5e-3)

    # bf16 MXU fast path (default for production) — looser tolerance vs f32 reference.
    w16, m16 = prepare_params(params, n_input, n_z, n_clusters,
                              compute_dtype=jnp.bfloat16)
    x_bar16, q16, z16 = idec_forward(x, w16, m16)
    jax.block_until_ready((x_bar16, q16, z16))
    assert jnp.allclose(x_bar16, xb_r, atol=2e-1, rtol=2e-1)
    assert jnp.allclose(q16, q_r, atol=2e-1, rtol=2e-1)
    assert jnp.allclose(z16, z_r, atol=2e-1, rtol=2e-1)

    print("KERNEL_OK")
</pallas_src>

<mosaic_0001>
module attributes {stable_mosaic.version = 11 : i64} {
  func.func @idec_kernel(%arg0: i32, %arg1: memref<8x128xf32, #tpu.memory_space<vmem>>, %arg2: memref<128x128xf32, #tpu.memory_space<vmem>>, %arg3: memref<1x128xf32, #tpu.memory_space<vmem>>, %arg4: memref<128x128xf32, #tpu.memory_space<vmem>>, %arg5: memref<1x128xf32, #tpu.memory_space<vmem>>, %arg6: memref<128x128xf32, #tpu.memory_space<vmem>>, %arg7: memref<1x128xf32, #tpu.memory_space<vmem>>, %arg8: memref<128x128xf32, #tpu.memory_space<vmem>>, %arg9: memref<1x128xf32, #tpu.memory_space<vmem>>, %arg10: memref<128x128xf32, #tpu.memory_space<vmem>>, %arg11: memref<1x128xf32, #tpu.memory_space<vmem>>, %arg12: memref<128x128xf32, #tpu.memory_space<vmem>>, %arg13: memref<1x128xf32, #tpu.memory_space<vmem>>, %arg14: memref<128x128xf32, #tpu.memory_space<vmem>>, %arg15: memref<1x128xf32, #tpu.memory_space<vmem>>, %arg16: memref<128x128xf32, #tpu.memory_space<vmem>>, %arg17: memref<1x128xf32, #tpu.memory_space<vmem>>, %arg18: memref<128x128xf32, #tpu.memory_space<vmem>>, %arg19: memref<1x128xf32, #tpu.memory_space<vmem>>, %arg20: memref<8x128xf32, #tpu.memory_space<vmem>>, %arg21: memref<8x128xf32, #tpu.memory_space<vmem>>, %arg22: memref<8x128xf32, #tpu.memory_space<vmem>>) attributes {dimension_semantics = [#tpu.dimension_semantics<parallel>], iteration_bounds = array<i64: 1>, scalar_prefetch = 0 : i64, scratch_operands = 0 : i64, tpu.core_type = #tpu.core_type<tc>, window_params = [{transform_indices = @transform_0, window_bounds = array<i64: 8, 128>}, {pipeline_mode = #tpu.pipeline_mode<synchronous>, transform_indices = @transform_1, window_bounds = array<i64: 128, 128>}, {pipeline_mode = #tpu.pipeline_mode<synchronous>, transform_indices = @transform_2, window_bounds = array<i64: 1, 128>}, {pipeline_mode = #tpu.pipeline_mode<synchronous>, transform_indices = @transform_3, window_bounds = array<i64: 128, 128>}, {pipeline_mode = #tpu.pipeline_mode<synchronous>, transform_indices = @transform_4, window_bounds = array<i64: 1, 128>}, {pipeline_mode = #tpu.pipeline_mode<synchronous>, transform_indices = @transform_5, window_bounds = array<i64: 128, 128>}, {pipeline_mode = #tpu.pipeline_mode<synchronous>, transform_indices = @transform_6, window_bounds = array<i64: 1, 128>}, {pipeline_mode = #tpu.pipeline_mode<synchronous>, transform_indices = @transform_7, window_bounds = array<i64: 128, 128>}, {pipeline_mode = #tpu.pipeline_mode<synchronous>, transform_indices = @transform_8, window_bounds = array<i64: 1, 128>}, {pipeline_mode = #tpu.pipeline_mode<synchronous>, transform_indices = @transform_9, window_bounds = array<i64: 128, 128>}, {pipeline_mode = #tpu.pipeline_mode<synchronous>, transform_indices = @transform_10, window_bounds = array<i64: 1, 128>}, {pipeline_mode = #tpu.pipeline_mode<synchronous>, transform_indices = @transform_11, window_bounds = array<i64: 128, 128>}, {pipeline_mode = #tpu.pipeline_mode<synchronous>, transform_indices = @transform_12, window_bounds = array<i64: 1, 128>}, {pipeline_mode = #tpu.pipeline_mode<synchronous>, transform_indices = @transform_13, window_bounds = array<i64: 128, 128>}, {pipeline_mode = #tpu.pipeline_mode<synchronous>, transform_indices = @transform_14, window_bounds = array<i64: 1, 128>}, {pipeline_mode = #tpu.pipeline_mode<synchronous>, transform_indices = @transform_15, window_bounds = array<i64: 128, 128>}, {pipeline_mode = #tpu.pipeline_mode<synchronous>, transform_indices = @transform_16, window_bounds = array<i64: 1, 128>}, {pipeline_mode = #tpu.pipeline_mode<synchronous>, transform_indices = @transform_17, window_bounds = array<i64: 128, 128>}, {pipeline_mode = #tpu.pipeline_mode<synchronous>, transform_indices = @transform_18, window_bounds = array<i64: 1, 128>}, {transform_indices = @transform_19, window_bounds = array<i64: 8, 128>}, {transform_indices = @transform_20, window_bounds = array<i64: 8, 128>}, {transform_indices = @transform_21, window_bounds = array<i64: 8, 128>}]} {
    %c0 = arith.constant 0 : index
    %c0_0 = arith.constant 0 : index
    %0 = vector.load %arg1[%c0, %c0_0] : memref<8x128xf32, #tpu.memory_space<vmem>>, vector<8x128xf32>
    %c0_1 = arith.constant 0 : index
    %c0_2 = arith.constant 0 : index
    %1 = vector.load %arg2[%c0_1, %c0_2] : memref<128x128xf32, #tpu.memory_space<vmem>>, vector<128x128xf32>
    %cst = arith.constant dense<0.000000e+00> : vector<8x128xf32>
    %2 = tpu.matmul %0, %1, %cst {dimension_numbers = #tpu.dot_dimension_numbers<[1], [0], [0], [1], [0, 0, 1, 1], [], []>} : vector<8x128xf32>, vector<128x128xf32>, vector<8x128xf32> -> vector<8x128xf32>
    %c0_3 = arith.constant 0 : index
    %c0_4 = arith.constant 0 : index
    %3 = vector.load %arg3[%c0_3, %c0_4] : memref<1x128xf32, #tpu.memory_space<vmem>>, vector<1x128xf32>
    %4 = vector.broadcast %3 : vector<1x128xf32> to vector<8x128xf32>
    %5 = arith.addf %2, %4 : vector<8x128xf32>
    %cst_5 = arith.constant 0.000000e+00 : f32
    %6 = vector.broadcast %cst_5 : f32 to vector<8x128xf32>
    %7 = arith.maximumf %5, %6 : vector<8x128xf32>
    %c0_6 = arith.constant 0 : index
    %c0_7 = arith.constant 0 : index
    %8 = vector.load %arg4[%c0_6, %c0_7] : memref<128x128xf32, #tpu.memory_space<vmem>>, vector<128x128xf32>
    %cst_8 = arith.constant dense<0.000000e+00> : vector<8x128xf32>
    %9 = tpu.matmul %7, %8, %cst_8 {dimension_numbers = #tpu.dot_dimension_numbers<[1], [0], [0], [1], [0, 0, 1, 1], [], []>} : vector<8x128xf32>, vector<128x128xf32>, vector<8x128xf32> -> vector<8x128xf32>
    %c0_9 = arith.constant 0 : index
    %c0_10 = arith.constant 0 : index
    %10 = vector.load %arg5[%c0_9, %c0_10] : memref<1x128xf32, #tpu.memory_space<vmem>>, vector<1x128xf32>
    %11 = vector.broadcast %10 : vector<1x128xf32> to vector<8x128xf32>
    %12 = arith.addf %9, %11 : vector<8x128xf32>
    %cst_11 = arith.constant 0.000000e+00 : f32
    %13 = vector.broadcast %cst_11 : f32 to vector<8x128xf32>
    %14 = arith.maximumf %12, %13 : vector<8x128xf32>
    %c0_12 = arith.constant 0 : index
    %c0_13 = arith.constant 0 : index
    %15 = vector.load %arg6[%c0_12, %c0_13] : memref<128x128xf32, #tpu.memory_space<vmem>>, vector<128x128xf32>
    %cst_14 = arith.constant dense<0.000000e+00> : vector<8x128xf32>
    %16 = tpu.matmul %14, %15, %cst_14 {dimension_numbers = #tpu.dot_dimension_numbers<[1], [0], [0], [1], [0, 0, 1, 1], [], []>} : vector<8x128xf32>, vector<128x128xf32>, vector<8x128xf32> -> vector<8x128xf32>
    %c0_15 = arith.constant 0 : index
    %c0_16 = arith.constant 0 : index
    %17 = vector.load %arg7[%c0_15, %c0_16] : memref<1x128xf32, #tpu.memory_space<vmem>>, vector<1x128xf32>
    %18 = vector.broadcast %17 : vector<1x128xf32> to vector<8x128xf32>
    %19 = arith.addf %16, %18 : vector<8x128xf32>
    %cst_17 = arith.constant 0.000000e+00 : f32
    %20 = vector.broadcast %cst_17 : f32 to vector<8x128xf32>
    %21 = arith.maximumf %19, %20 : vector<8x128xf32>
    %c0_18 = arith.constant 0 : index
    %c0_19 = arith.constant 0 : index
    %22 = vector.load %arg8[%c0_18, %c0_19] : memref<128x128xf32, #tpu.memory_space<vmem>>, vector<128x128xf32>
    %cst_20 = arith.constant dense<0.000000e+00> : vector<8x128xf32>
    %23 = tpu.matmul %21, %22, %cst_20 {dimension_numbers = #tpu.dot_dimension_numbers<[1], [0], [0], [1], [0, 0, 1, 1], [], []>} : vector<8x128xf32>, vector<128x128xf32>, vector<8x128xf32> -> vector<8x128xf32>
    %c0_21 = arith.constant 0 : index
    %c0_22 = arith.constant 0 : index
    %24 = vector.load %arg9[%c0_21, %c0_22] : memref<1x128xf32, #tpu.memory_space<vmem>>, vector<1x128xf32>
    %25 = vector.broadcast %24 : vector<1x128xf32> to vector<8x128xf32>
    %26 = arith.addf %23, %25 : vector<8x128xf32>
    %c0_23 = arith.constant 0 : index
    %c0_24 = arith.constant 0 : index
    %27 = vector.load %arg10[%c0_23, %c0_24] : memref<128x128xf32, #tpu.memory_space<vmem>>, vector<128x128xf32>
    %cst_25 = arith.constant dense<0.000000e+00> : vector<8x128xf32>
    %28 = tpu.matmul %26, %27, %cst_25 {dimension_numbers = #tpu.dot_dimension_numbers<[1], [0], [0], [1], [0, 0, 1, 1], [], []>} : vector<8x128xf32>, vector<128x128xf32>, vector<8x128xf32> -> vector<8x128xf32>
    %c0_26 = arith.constant 0 : index
    %c0_27 = arith.constant 0 : index
    %29 = vector.load %arg11[%c0_26, %c0_27] : memref<1x128xf32, #tpu.memory_space<vmem>>, vector<1x128xf32>
    %30 = vector.broadcast %29 : vector<1x128xf32> to vector<8x128xf32>
    %31 = arith.addf %28, %30 : vector<8x128xf32>
    %cst_28 = arith.constant 0.000000e+00 : f32
    %32 = vector.broadcast %cst_28 : f32 to vector<8x128xf32>
    %33 = arith.maximumf %31, %32 : vector<8x128xf32>
    %c0_29 = arith.constant 0 : index
    %c0_30 = arith.constant 0 : index
    %34 = vector.load %arg12[%c0_29, %c0_30] : memref<128x128xf32, #tpu.memory_space<vmem>>, vector<128x128xf32>
    %cst_31 = arith.constant dense<0.000000e+00> : vector<8x128xf32>
    %35 = tpu.matmul %33, %34, %cst_31 {dimension_numbers = #tpu.dot_dimension_numbers<[1], [0], [0], [1], [0, 0, 1, 1], [], []>} : vector<8x128xf32>, vector<128x128xf32>, vector<8x128xf32> -> vector<8x128xf32>
    %c0_32 = arith.constant 0 : index
    %c0_33 = arith.constant 0 : index
    %36 = vector.load %arg13[%c0_32, %c0_33] : memref<1x128xf32, #tpu.memory_space<vmem>>, vector<1x128xf32>
    %37 = vector.broadcast %36 : vector<1x128xf32> to vector<8x128xf32>
    %38 = arith.addf %35, %37 : vector<8x128xf32>
    %cst_34 = arith.constant 0.000000e+00 : f32
    %39 = vector.broadcast %cst_34 : f32 to vector<8x128xf32>
    %40 = arith.maximumf %38, %39 : vector<8x128xf32>
    %c0_35 = arith.constant 0 : index
    %c0_36 = arith.constant 0 : index
    %41 = vector.load %arg14[%c0_35, %c0_36] : memref<128x128xf32, #tpu.memory_space<vmem>>, vector<128x128xf32>
    %cst_37 = arith.constant dense<0.000000e+00> : vector<8x128xf32>
    %42 = tpu.matmul %40, %41, %cst_37 {dimension_numbers = #tpu.dot_dimension_numbers<[1], [0], [0], [1], [0, 0, 1, 1], [], []>} : vector<8x128xf32>, vector<128x128xf32>, vector<8x128xf32> -> vector<8x128xf32>
    %c0_38 = arith.constant 0 : index
    %c0_39 = arith.constant 0 : index
    %43 = vector.load %arg15[%c0_38, %c0_39] : memref<1x128xf32, #tpu.memory_space<vmem>>, vector<1x128xf32>
    %44 = vector.broadcast %43 : vector<1x128xf32> to vector<8x128xf32>
    %45 = arith.addf %42, %44 : vector<8x128xf32>
    %cst_40 = arith.constant 0.000000e+00 : f32
    %46 = vector.broadcast %cst_40 : f32 to vector<8x128xf32>
    %47 = arith.maximumf %45, %46 : vector<8x128xf32>
    %c0_41 = arith.constant 0 : index
    %c0_42 = arith.constant 0 : index
    %48 = vector.load %arg16[%c0_41, %c0_42] : memref<128x128xf32, #tpu.memory_space<vmem>>, vector<128x128xf32>
    %cst_43 = arith.constant dense<0.000000e+00> : vector<8x128xf32>
    %49 = tpu.matmul %47, %48, %cst_43 {dimension_numbers = #tpu.dot_dimension_numbers<[1], [0], [0], [1], [0, 0, 1, 1], [], []>} : vector<8x128xf32>, vector<128x128xf32>, vector<8x128xf32> -> vector<8x128xf32>
    %c0_44 = arith.constant 0 : index
    %c0_45 = arith.constant 0 : index
    %50 = vector.load %arg17[%c0_44, %c0_45] : memref<1x128xf32, #tpu.memory_space<vmem>>, vector<1x128xf32>
    %51 = vector.broadcast %50 : vector<1x128xf32> to vector<8x128xf32>
    %52 = arith.addf %49, %51 : vector<8x128xf32>
    %c0_46 = arith.constant 0 : index
    %c0_47 = arith.constant 0 : index
    %53 = vector.load %arg18[%c0_46, %c0_47] : memref<128x128xf32, #tpu.memory_space<vmem>>, vector<128x128xf32>
    %54 = arith.mulf %26, %26 : vector<8x128xf32>
    %cst_48 = arith.constant dense<0.000000e+00> : vector<8xf32>
    %55 = vector.multi_reduction <add>, %54, %cst_48 [1] : vector<8x128xf32> to vector<8xf32>
    %56 = vector.shape_cast %55 : vector<8xf32> to vector<8x1xf32>
    %c0_49 = arith.constant 0 : index
    %c0_50 = arith.constant 0 : index
    %57 = vector.load %arg19[%c0_49, %c0_50] : memref<1x128xf32, #tpu.memory_space<vmem>>, vector<1x128xf32>
    %cst_51 = arith.constant dense<0.000000e+00> : vector<8x128xf32>
    %58 = tpu.matmul %26, %53, %cst_51 {dimension_numbers = #tpu.dot_dimension_numbers<[1], [0], [0], [1], [0, 0, 1, 1], [], []>} : vector<8x128xf32>, vector<128x128xf32>, vector<8x128xf32> -> vector<8x128xf32>
    %59 = vector.broadcast %56 : vector<8x1xf32> to vector<8x128xf32>
    %60 = vector.broadcast %57 : vector<1x128xf32> to vector<8x128xf32>
    %61 = arith.addf %59, %60 : vector<8x128xf32>
    %cst_52 = arith.constant 2.000000e+00 : f32
    %62 = vector.broadcast %cst_52 : f32 to vector<8x128xf32>
    %63 = arith.mulf %62, %58 : vector<8x128xf32>
    %64 = arith.subf %61, %63 : vector<8x128xf32>
    %cst_53 = arith.constant 0.000000e+00 : f32
    %65 = vector.broadcast %cst_53 : f32 to vector<8x128xf32>
    %66 = arith.maximumf %64, %65 : vector<8x128xf32>
    %cst_54 = arith.constant 1.000000e+00 : f32
    %67 = vector.broadcast %cst_54 : f32 to vector<8x128xf32>
    %68 = arith.mulf %66, %67 : vector<8x128xf32>
    %cst_55 = arith.constant 1.000000e+00 : f32
    %69 = vector.broadcast %cst_55 : f32 to vector<8x128xf32>
    %70 = arith.addf %69, %68 : vector<8x128xf32>
    %71 = tpu.reciprocal %70 {approx = true} : vector<8x128xf32> -> vector<8x128xf32>
    %72 = tpu.iota {dimensions = array<i32: 1>} : vector<8x128xi32>
    %c4_i32 = arith.constant 4 : i32
    %73 = vector.broadcast %c4_i32 : i32 to vector<8x128xi32>
    %74 = arith.cmpi slt, %72, %73 : vector<8x128xi32>
    %cst_56 = arith.constant 0.000000e+00 : f32
    %75 = vector.broadcast %cst_56 : f32 to vector<8x128xf32>
    %76 = arith.select %74, %71, %75 : vector<8x128xi1>, vector<8x128xf32>
    %cst_57 = arith.constant dense<0.000000e+00> : vector<8xf32>
    %77 = vector.multi_reduction <add>, %76, %cst_57 [1] : vector<8x128xf32> to vector<8xf32>
    %78 = vector.shape_cast %77 : vector<8xf32> to vector<8x1xf32>
    %79 = vector.broadcast %78 : vector<8x1xf32> to vector<8x128xf32>
    %80 = arith.divf %76, %79 : vector<8x128xf32>
    %c0_58 = arith.constant 0 : index
    %c0_59 = arith.constant 0 : index
    %81 = vector.load %arg20[%c0_58, %c0_59] : memref<8x128xf32, #tpu.memory_space<vmem>>, vector<8x128xf32>
    tpu.vector_store %arg20[%c0_58, %c0_59], %52 {strides = array<i32>} : memref<8x128xf32, #tpu.memory_space<vmem>>, vector<8x128xf32>,
    %c0_60 = arith.constant 0 : index
    %c0_61 = arith.constant 0 : index
    %82 = vector.load %arg21[%c0_60, %c0_61] : memref<8x128xf32, #tpu.memory_space<vmem>>, vector<8x128xf32>
    tpu.vector_store %arg21[%c0_60, %c0_61], %26 {strides = array<i32>} : memref<8x128xf32, #tpu.memory_space<vmem>>, vector<8x128xf32>,
    %c0_62 = arith.constant 0 : index
    %c0_63 = arith.constant 0 : index
    %83 = vector.load %arg22[%c0_62, %c0_63] : memref<8x128xf32, #tpu.memory_space<vmem>>, vector<8x128xf32>
    tpu.vector_store %arg22[%c0_62, %c0_63], %80 {strides = array<i32>} : memref<8x128xf32, #tpu.memory_space<vmem>>, vector<8x128xf32>,
    return
  }
  func.func @transform_0(%arg0: i32) -> (i32, i32) {
    %c0_i32 = arith.constant 0 : i32
    %c0_i32_0 = arith.constant 0 : i32
    return %arg0, %c0_i32 : i32, i32
  }
  func.func @transform_1(%arg0: i32) -> (i32, i32) {
    %c0_i32 = arith.constant 0 : i32
    %c0_i32_0 = arith.constant 0 : i32
    %c0_i32_1 = arith.constant 0 : i32
    return %c0_i32, %c0_i32_0 : i32, i32
  }
  func.func @transform_2(%arg0: i32) -> (i32, i32) {
    %c0_i32 = arith.constant 0 : i32
    %c0_i32_0 = arith.constant 0 : i32
    %c0_i32_1 = arith.constant 0 : i32
    return %c0_i32, %c0_i32_0 : i32, i32
  }
  func.func @transform_3(%arg0: i32) -> (i32, i32) {
    %c0_i32 = arith.constant 0 : i32
    %c0_i32_0 = arith.constant 0 : i32
    %c0_i32_1 = arith.constant 0 : i32
    return %c0_i32, %c0_i32_0 : i32, i32
  }
  func.func @transform_4(%arg0: i32) -> (i32, i32) {
    %c0_i32 = arith.constant 0 : i32
    %c0_i32_0 = arith.constant 0 : i32
    %c0_i32_1 = arith.constant 0 : i32
    return %c0_i32, %c0_i32_0 : i32, i32
  }
  func.func @transform_5(%arg0: i32) -> (i32, i32) {
    %c0_i32 = arith.constant 0 : i32
    %c0_i32_0 = arith.constant 0 : i32
    %c0_i32_1 = arith.constant 0 : i32
    return %c0_i32, %c0_i32_0 : i32, i32
  }
  func.func @transform_6(%arg0: i32) -> (i32, i32) {
    %c0_i32 = arith.constant 0 : i32
    %c0_i32_0 = arith.constant 0 : i32
    %c0_i32_1 = arith.constant 0 : i32
    return %c0_i32, %c0_i32_0 : i32, i32
  }
  func.func @transform_7(%arg0: i32) -> (i32, i32) {
    %c0_i32 = arith.constant 0 : i32
    %c0_i32_0 = arith.constant 0 : i32
    %c0_i32_1 = arith.constant 0 : i32
    return %c0_i32, %c0_i32_0 : i32, i32
  }
  func.func @transform_8(%arg0: i32) -> (i32, i32) {
    %c0_i32 = arith.constant 0 : i32
    %c0_i32_0 = arith.constant 0 : i32
    %c0_i32_1 = arith.constant 0 : i32
    return %c0_i32, %c0_i32_0 : i32, i32
  }
  func.func @transform_9(%arg0: i32) -> (i32, i32) {
    %c0_i32 = arith.constant 0 : i32
    %c0_i32_0 = arith.constant 0 : i32
    %c0_i32_1 = arith.constant 0 : i32
    return %c0_i32, %c0_i32_0 : i32, i32
  }
  func.func @transform_10(%arg0: i32) -> (i32, i32) {
    %c0_i32 = arith.constant 0 : i32
    %c0_i32_0 = arith.constant 0 : i32
    %c0_i32_1 = arith.constant 0 : i32
    return %c0_i32, %c0_i32_0 : i32, i32
  }
  func.func @transform_11(%arg0: i32) -> (i32, i32) {
    %c0_i32 = arith.constant 0 : i32
    %c0_i32_0 = arith.constant 0 : i32
    %c0_i32_1 = arith.constant 0 : i32
    return %c0_i32, %c0_i32_0 : i32, i32
  }
  func.func @transform_12(%arg0: i32) -> (i32, i32) {
    %c0_i32 = arith.constant 0 : i32
    %c0_i32_0 = arith.constant 0 : i32
    %c0_i32_1 = arith.constant 0 : i32
    return %c0_i32, %c0_i32_0 : i32, i32
  }
  func.func @transform_13(%arg0: i32) -> (i32, i32) {
    %c0_i32 = arith.constant 0 : i32
    %c0_i32_0 = arith.constant 0 : i32
    %c0_i32_1 = arith.constant 0 : i32
    return %c0_i32, %c0_i32_0 : i32, i32
  }
  func.func @transform_14(%arg0: i32) -> (i32, i32) {
    %c0_i32 = arith.constant 0 : i32
    %c0_i32_0 = arith.constant 0 : i32
    %c0_i32_1 = arith.constant 0 : i32
    return %c0_i32, %c0_i32_0 : i32, i32
  }
  func.func @transform_15(%arg0: i32) -> (i32, i32) {
    %c0_i32 = arith.constant 0 : i32
    %c0_i32_0 = arith.constant 0 : i32
    %c0_i32_1 = arith.constant 0 : i32
    return %c0_i32, %c0_i32_0 : i32, i32
  }
  func.func @transform_16(%arg0: i32) -> (i32, i32) {
    %c0_i32 = arith.constant 0 : i32
    %c0_i32_0 = arith.constant 0 : i32
    %c0_i32_1 = arith.constant 0 : i32
    return %c0_i32, %c0_i32_0 : i32, i32
  }
  func.func @transform_17(%arg0: i32) -> (i32, i32) {
    %c0_i32 = arith.constant 0 : i32
    %c0_i32_0 = arith.constant 0 : i32
    %c0_i32_1 = arith.constant 0 : i32
    return %c0_i32, %c0_i32_0 : i32, i32
  }
  func.func @transform_18(%arg0: i32) -> (i32, i32) {
    %c0_i32 = arith.constant 0 : i32
    %c0_i32_0 = arith.constant 0 : i32
    %c0_i32_1 = arith.constant 0 : i32
    return %c0_i32, %c0_i32_0 : i32, i32
  }
  func.func @transform_19(%arg0: i32) -> (i32, i32) {
    %c0_i32 = arith.constant 0 : i32
    %c0_i32_0 = arith.constant 0 : i32
    return %arg0, %c0_i32 : i32, i32
  }
  func.func @transform_20(%arg0: i32) -> (i32, i32) {
    %c0_i32 = arith.constant 0 : i32
    %c0_i32_0 = arith.constant 0 : i32
    return %arg0, %c0_i32 : i32, i32
  }
  func.func @transform_21(%arg0: i32) -> (i32, i32) {
    %c0_i32 = arith.constant 0 : i32
    %c0_i32_0 = arith.constant 0 : i32
    return %arg0, %c0_i32 : i32, i32
  }
}

</mosaic_0001>

<bundles_post_ra>
// kernel: tpu_custom_call.1
= control target key start
LH: loop header
LB: loop body
LE: loop exit
PB: predicated region body
PF: predicated region fallthrough
CT: control target
= control target key end

     0   :  { %s2275_s0 = inlined_call_operand.hbm [shape: f32[8,128], index: 0, kind: input, shape index: {}]   ;;  %s2276_s1 = inlined_call_operand.hbm [shape: f32[128,128], index: 1, kind: input, shape index: {}]   ;;  %s2277_s2 = inlined_call_operand.vmem [shape: f32[1,128], index: 2, kind: input, shape index: {}]   ;;  %s2278_s3 = inlined_call_operand.hbm [shape: f32[128,128], index: 3, kind: input, shape index: {}]   ;;  %s2279_s4 = inlined_call_operand.vmem [shape: f32[1,128], index: 4, kind: input, shape index: {}]   ;;  %s2280_s5 = inlined_call_operand.hbm [shape: f32[128,128], index: 5, kind: input, shape index: {}]   ;;  %s2281_s6 = inlined_call_operand.vmem [shape: f32[1,128], index: 6, kind: input, shape index: {}]   ;;  %s2282_s7 = inlined_call_operand.hbm [shape: f32[128,128], index: 7, kind: input, shape index: {}]   ;;  %s2283_s8 = inlined_call_operand.vmem [shape: f32[1,128], index: 8, kind: input, shape index: {}]   ;;  %s2284_s9 = inlined_call_operand.hbm [shape: f32[128,128], index: 9, kind: input, shape index: {}]   ;;  %s2285_s10 = inlined_call_operand.vmem [shape: f32[1,128], index: 10, kind: input, shape index: {}]   ;;  %s2286_s11 = inlined_call_operand.hbm [shape: f32[128,128], index: 11, kind: input, shape index: {}]   ;;  %s2287_s12 = inlined_call_operand.vmem [shape: f32[1,128], index: 12, kind: input, shape index: {}]   ;;  %s2288_s13 = inlined_call_operand.hbm [shape: f32[128,128], index: 13, kind: input, shape index: {}]   ;;  %s2289_s14 = inlined_call_operand.vmem [shape: f32[1,128], index: 14, kind: input, shape index: {}]   ;;  %s2290_s15 = inlined_call_operand.hbm [shape: f32[128,128], index: 15, kind: input, shape index: {}]   ;;  %s2291_s16 = inlined_call_operand.vmem [shape: f32[1,128], index: 16, kind: input, shape index: {}]   ;;  %s2292_s17 = inlined_call_operand.hbm [shape: f32[128,128], index: 17, kind: input, shape index: {}]   ;;  %s2293_s18 = inlined_call_operand.vmem [shape: f32[1,128], index: 18, kind: input, shape index: {}]   ;;  %s2294_s19 = inlined_call_operand.hbm [shape: f32[8,128], index: 19, kind: output, shape index: {0}]   ;;  %s2295_s20 = inlined_call_operand.hbm [shape: f32[8,128], index: 20, kind: output, shape index: {1}]   ;;  %s2296_s21 = inlined_call_operand.hbm [shape: f32[8,128], index: 21, kind: output, shape index: {2}]  }
   0x1   :  { %2297 = sst [smem:[#allocation31_spill]] %s2275_s0 }
   0x2   :  { %2298 = sst [smem:[#allocation32_spill]] %s2276_s1 }
   0x3   :  { %2299 = sst [smem:[#allocation33_spill]] %s2277_s2 }
   0x4   :  { %2300 = sst [smem:[#allocation34_spill]] %s2278_s3 }
   0x5   :  { %2301 = sst [smem:[#allocation35_spill]] %s2279_s4 }
   0x6   :  { %2302 = sst [smem:[#allocation36_spill]] %s2280_s5 }
   0x7   :  { %27 = vsyncpa [#allocation3], 0 }
   0x8   :  { %28 = vsyncpa [#allocation6], 0 }
   0x9   :  { %29 = vsyncpa [#allocation9], 0 }
   0xa   :  { %30 = vsyncpa [#allocation12], 0 }
   0xb   :  { %31 = vsyncpa [#allocation15], 0 }
   0xc   :  { %32 = vsyncpa [#allocation18], 0 }
   0xd   :  { %33 = vsyncpa [#allocation4], 0 }
   0xe   :  { %34 = vsyncpa [#allocation21], 0  ;;  %s1886_s2 = smov [#allocation5]  }
   0xf   :  { %s50_s25 = sshll.u32 %s1886_s2, 4  ;;  %s51_s25 = int_to_ptr.vmem [resolvable:$true] %s50_s25 }
  0x10   :  { %s1618_s26 = scalar_lea.vmem %s51_s25, 2048  ;;  %p1623_p1 = scmp.lt.s32.totalorder %s51_s25, %s51_s25 }
  0x11   :  { %p1619_p0 = scmp.ne.s32.totalorder %s51_s25, %s1618_s26  ;;  %p1624_p2 = scmp.lt.s32.totalorder %s1618_s26, %s1618_s26 }
  0x13   :  { %p1625_p3 = por %p1624_p2, %p1623_p1 }
  0x15   :  { %p1626_p4 = pnand %p1625_p3, %p1619_p0 }
  0x17   :  { %1629 = shalt.err (!%p1626_p4)
}
  0x18   :  { %s1887_s27 = smov 128   ;;  %s1888_s3 = smov 8  }
  0x19   :  { %s2303_s0 = sld [smem:[#allocation32_spill]]  ;;  %s1889_s4 = smov [#allocation8]  }
  0x1a   :  { %s78_s30 = sshll.u32 %s1889_s4, 4  ;;  %s1890_s5 = smov [#allocation11]   ;;  %s79_s30 = int_to_ptr.vmem [resolvable:$true] %s78_s30 }
  0x1b   :  { %s106_s22 = sshll.u32 %s1890_s5, 4  ;;  %s1638_s23 = scalar_lea.vmem %s79_s30, 2048  ;;  %s107_s22 = int_to_ptr.vmem [resolvable:$true] %s106_s22 }
  0x1c   :  { %p1639_p5 = scmp.ne.s32.totalorder %s79_s30, %s1638_s23  ;;  %p1643_p6 = scmp.lt.s32.totalorder %s79_s30, %s79_s30 }
  0x1d   :  { %p1644_p7 = scmp.lt.s32.totalorder %s1638_s23, %s1638_s23 }
  0x1f   :  { %56 = dma.hbm_to_vmem [thread:$0]  %s2303_s0, 2048, %s51_s25, [#allocation6], %s1887_s27, %s1887_s27, %s1888_s3  }
  0x20   :  { %p1645_p8 = por %p1644_p7, %p1643_p6 }
  0x22   :  { %p1646_p9 = pnand %p1645_p8, %p1639_p5 }
  0x24   :  { %1649 = shalt.err (!%p1646_p9)
}
  0x25   :  { %s2304_s2 = sld [smem:[#allocation36_spill]]  ;;  %s1658_s25 = scalar_lea.vmem %s107_s22, 2048 }
  0x26   :  { %p1659_p10 = scmp.ne.s32.totalorder %s107_s22, %s1658_s25  ;;  %p1663_p11 = scmp.lt.s32.totalorder %s107_s22, %s107_s22 }
  0x27   :  { %p1664_p12 = scmp.lt.s32.totalorder %s1658_s25, %s1658_s25 }
  0x29   :  { %p1665_p13 = por %p1664_p12, %p1663_p11 }
  0x2b   :  { %84 = dma.hbm_to_vmem [thread:$0]  %s2304_s2, 2048, %s79_s30, [#allocation9], %s1887_s27, %s1887_s27, %s1888_s3  }
  0x2c   :  { %p1666_p0 = pnand %p1665_p13, %p1659_p10 }
  0x2e   :  { %1669 = shalt.err (!%p1666_p0)
}
  0x2f   :  { %112 = dma.hbm_to_vmem [thread:$0]  %s2284_s9, 2048, %s107_s22, [#allocation12], %s1887_s27, %s1887_s27, %s1888_s3  }
  0x30   :  { %s1891_s29 = smov [#allocation14]   ;;  %s1892_s4 = smov [#allocation2]  }
  0x31   :  { %s134_s0 = sshll.u32 %s1891_s29, 4  ;;  %s41_s30 = sshll.u32 %s1892_s4, 4  ;;  %s135_s0 = int_to_ptr.vmem [resolvable:$true] %s134_s0  ;;  %s42_s30 = int_to_ptr.vmem [resolvable:$true] %s41_s30 }
  0x32   :  { %s1678_s5 = scalar_lea.vmem %s135_s0, 2048  ;;  %p1683_p2 = scmp.lt.s32.totalorder %s135_s0, %s135_s0 }
  0x33   :  { %p1679_p1 = scmp.ne.s32.totalorder %s135_s0, %s1678_s5  ;;  %p1684_p3 = scmp.lt.s32.totalorder %s1678_s5, %s1678_s5 }
  0x35   :  { %p1685_p4 = por %p1684_p3, %p1683_p2 }
  0x37   :  { %p1686_p5 = pnand %p1685_p4, %p1679_p1 }
  0x39   :  { %1689 = shalt.err (!%p1686_p5)
}
  0x3a   :  { %140 = dma.hbm_to_vmem [thread:$0]  %s2288_s13, 2048, %s135_s0, [#allocation15], %s1887_s27, %s1887_s27, %s1888_s3  }
  0x3b   :  { %s1698_s9 = scalar_lea.vmem %s42_s30, 128  ;;  %p1703_p7 = scmp.lt.s32.totalorder %s42_s30, %s42_s30 }
  0x3c   :  { %p1699_p6 = scmp.ne.s32.totalorder %s42_s30, %s1698_s9  ;;  %p1704_p8 = scmp.lt.s32.totalorder %s1698_s9, %s1698_s9 }
  0x3e   :  { %p1705_p9 = por %p1704_p8, %p1703_p7 }
  0x40   :  { %p1706_p10 = pnand %p1705_p9, %p1699_p6 }
  0x42   :  { %1709 = shalt.err (!%p1706_p10)
}
  0x43   :  { %s2305_s2 = sld [smem:[#allocation31_spill]]  ;;  %s1893_s25 = smov [#allocation7]  }
  0x44   :  { %s64_s26 = sshll.u32 %s1893_s25, 4  ;;  %s1894_s28 = smov [#allocation10]   ;;  %s65_s26 = int_to_ptr.vmem [resolvable:$true] %s64_s26 }
  0x45   :  { %s92_s29 = sshll.u32 %s1894_s28, 4  ;;  %s1718_s4 = scalar_lea.vmem %s65_s26, 2048  ;;  %s93_s29 = int_to_ptr.vmem [resolvable:$true] %s92_s29 }
  0x46   :  { %p1719_p11 = scmp.ne.s32.totalorder %s65_s26, %s1718_s4  ;;  %p1723_p12 = scmp.lt.s32.totalorder %s65_s26, %s65_s26 }
  0x47   :  { %p1724_p13 = scmp.lt.s32.totalorder %s1718_s4, %s1718_s4 }
  0x49   :  { %44 = dma.hbm_to_vmem [thread:$0]  %s2305_s2, 128, %s42_s30, [#allocation3]  }
  0x4a   :  { %p1725_p0 = por %p1724_p13, %p1723_p12 }
  0x4c   :  { %p1726_p1 = pnand %p1725_p0, %p1719_p11 }
  0x4e   :  { %1729 = shalt.err (!%p1726_p1)
}
  0x4f   :  { %s2306_s5 = sld [smem:[#allocation34_spill]]  ;;  %s1738_s30 = scalar_lea.vmem %s93_s29, 2048 }
  0x50   :  { %p1739_p2 = scmp.ne.s32.totalorder %s93_s29, %s1738_s30  ;;  %p1743_p3 = scmp.lt.s32.totalorder %s93_s29, %s93_s29 }
  0x51   :  { %p1744_p4 = scmp.lt.s32.totalorder %s1738_s30, %s1738_s30 }
  0x53   :  { %p1745_p5 = por %p1744_p4, %p1743_p3 }
  0x55   :  { %70 = dma.hbm_to_vmem [thread:$0]  %s2306_s5, 2048, %s65_s26, [#allocation6], %s1887_s27, %s1887_s27, %s1888_s3  }
  0x56   :  { %p1746_p6 = pnand %p1745_p5, %p1739_p2 }
  0x58   :  { %1749 = shalt.err (!%p1746_p6)
}
  0x59   :  { %98 = dma.hbm_to_vmem [thread:$0]  %s2282_s7, 2048, %s93_s29, [#allocation9], %s1887_s27, %s1887_s27, %s1888_s3  }
  0x5a   :  { %s1895_s9 = smov [#allocation13]   ;;  %s1896_s24 = smov [#allocation16]  }
  0x5b   :  { %s120_s22 = sshll.u32 %s1895_s9, 4  ;;  %s148_s2 = sshll.u32 %s1896_s24, 4  ;;  %s121_s22 = int_to_ptr.vmem [resolvable:$true] %s120_s22  ;;  %s149_s2 = int_to_ptr.vmem [resolvable:$true] %s148_s2 }
  0x5c   :  { %s1758_s25 = scalar_lea.vmem %s121_s22, 2048  ;;  %p1763_p8 = scmp.lt.s32.totalorder %s121_s22, %s121_s22 }
  0x5d   :  { %p1759_p7 = scmp.ne.s32.totalorder %s121_s22, %s1758_s25  ;;  %p1764_p9 = scmp.lt.s32.totalorder %s1758_s25, %s1758_s25 }
  0x5f   :  { %p1765_p10 = por %p1764_p9, %p1763_p8 }
  0x61   :  { %p1766_p11 = pnand %p1765_p10, %p1759_p7 }
  0x63   :  { %1769 = shalt.err (!%p1766_p11)
}
  0x64   :  { %126 = dma.hbm_to_vmem [thread:$0]  %s2286_s11, 2048, %s121_s22, [#allocation12], %s1887_s27, %s1887_s27, %s1888_s3  }
  0x65   :  { %s1778_s7 = scalar_lea.vmem %s149_s2, 2048  ;;  %p1783_p13 = scmp.lt.s32.totalorder %s149_s2, %s149_s2 }
  0x66   :  { %p1779_p12 = scmp.ne.s32.totalorder %s149_s2, %s1778_s7  ;;  %p1784_p0 = scmp.lt.s32.totalorder %s1778_s7, %s1778_s7 }
  0x68   :  { %p1785_p1 = por %p1784_p0, %p1783_p13 }
  0x6a   :  { %p1786_p2 = pnand %p1785_p1, %p1779_p12 }
  0x6c   :  { %1789 = shalt.err (!%p1786_p2)
}
  0x6d   :  { %154 = dma.hbm_to_vmem [thread:$0]  %s2290_s15, 2048, %s149_s2, [#allocation15], %s1887_s27, %s1887_s27, %s1888_s3  }
  0x6e   :  { %s1897_s13 = smov [#allocation17]  }
  0x6f   :  { %s162_s0 = sshll.u32 %s1897_s13, 4  ;;  %s163_s0 = int_to_ptr.vmem [resolvable:$true] %s162_s0 }
  0x70   :  { %s1798_s5 = scalar_lea.vmem %s163_s0, 2048  ;;  %p1803_p4 = scmp.lt.s32.totalorder %s163_s0, %s163_s0 }
  0x71   :  { %p1799_p3 = scmp.ne.s32.totalorder %s163_s0, %s1798_s5  ;;  %p1804_p5 = scmp.lt.s32.totalorder %s1798_s5, %s1798_s5 }
  0x73   :  { %p1805_p6 = por %p1804_p5, %p1803_p4 }
  0x75   :  { %p1806_p7 = pnand %p1805_p6, %p1799_p3 }
  0x77   :  { %1809 = shalt.err (!%p1806_p7)
}
  0x78   :  { %168 = dma.hbm_to_vmem [thread:$0]  %s2292_s17, 2048, %s163_s0, [#allocation18], %s1887_s27, %s1887_s27, %s1888_s3  }
  0x79   :  { %1870 = dma.done.wait [#allocation3], 128  }
  0x7a   :  { %1871 = vsyncadd [#allocation3], 4294967168 }
  0x7b   :  { %1872 = dma.done.wait [#allocation6], 4096  }
  0x7c   :  { %1873 = vsyncadd [#allocation6], 4294963200 }
  0x7d   :  { %1874 = dma.done.wait [#allocation9], 4096  }
  0x7e   :  { %1875 = vsyncadd [#allocation9], 4294963200 }
  0x7f   :  { %1876 = dma.done.wait [#allocation12], 4096  }
  0x80   :  { %1877 = vsyncadd [#allocation12], 4294963200 }
  0x81   :  { %1878 = dma.done.wait [#allocation15], 4096  }
  0x82   :  { %1879 = vsyncadd [#allocation15], 4294963200 }
  0x83   :  { %1880 = dma.done.wait [#allocation18], 2048  }
  0x84   :  { %1881 = vsyncadd [#allocation18], 4294965248  ;;  %v1898_v0 = vmov 0.0   ;;  %vm1899_vm0 = vmmov 0   ;;  %v217_v1 = vld [vmem:[#allocation5 + $0x78] sm:$0xff]  ;;  %v216_v2 = vld [vmem:[#allocation5 + $0x70] sm:$0xff] }
  0x85   :  { %1274 = vmatprep.subr.mxu0 %v1898_v0  ;;  %1306 = vmatprep.mubr.msk.f32.mxu0 %vm1899_vm0, %v1898_v0  ;;  %v215_v3 = vld [vmem:[#allocation5 + $0x68] sm:$0xff]  ;;  %v214_v4 = vld [vmem:[#allocation5 + $0x60] sm:$0xff]  ;;  %v311_v5 = vld [vmem:[#allocation7 + $0x78] sm:$0xff]  ;;  %s2307_s27 = sld [smem:[#allocation33_spill]] }
  0x86   :  { %1309 = vmatprep.subr.mxu1 %v1898_v0  ;;  %1341 = vmatprep.mubr.msk.f32.mxu1 %vm1899_vm0, %v1898_v0  ;;  %v213_v6 = vld [vmem:[#allocation5 + $0x58] sm:$0xff]  ;;  %v310_v7 = vld [vmem:[#allocation7 + $0x70] sm:$0xff]  ;;  %v309_v8 = vld [vmem:[#allocation7 + $0x68] sm:$0xff]  ;;  %s2308_s1 = sld [smem:[#allocation35_spill]] }
  0x87   :  { %1275 = vmatpush3.msra.mxu0 %v217_v1  ;;  %1310 = vmatpush3.msra.mxu1 %v311_v5  ;;  %v212_v9 = vld [vmem:[#allocation5 + $0x50] sm:$0xff]  ;;  %v308_v10 = vld [vmem:[#allocation7 + $0x60] sm:$0xff]  ;;  %v211_v11 = vld [vmem:[#allocation5 + $0x48] sm:$0xff] }
  0x88   :  { %1276 = vmatprep.subr.mxu0 %v1898_v0  ;;  %1311 = vmatprep.subr.mxu1 %v1898_v0  ;;  %v307_v12 = vld [vmem:[#allocation7 + $0x58] sm:$0xff]  ;;  %v210_v13 = vld [vmem:[#allocation5 + $0x40] sm:$0xff]  ;;  %v306_v14 = vld [vmem:[#allocation7 + $0x50] sm:$0xff] }
  0x89   :  { %1277 = vmatpush3.msra.mxu0 %v216_v2  ;;  %1312 = vmatpush3.msra.mxu1 %v310_v7  ;;  %v209_v15 = vld [vmem:[#allocation5 + $0x38] sm:$0xff]  ;;  %v305_v16 = vld [vmem:[#allocation7 + $0x48] sm:$0xff]  ;;  %v208_v17 = vld [vmem:[#allocation5 + $0x30] sm:$0xff] }
  0x8a   :  { %1278 = vmatprep.subr.mxu0 %v1898_v0  ;;  %1313 = vmatprep.subr.mxu1 %v1898_v0  ;;  %v304_v18 = vld [vmem:[#allocation7 + $0x40] sm:$0xff]  ;;  %v207_v19 = vld [vmem:[#allocation5 + $0x28] sm:$0xff]  ;;  %v303_v20 = vld [vmem:[#allocation7 + $0x38] sm:$0xff] }
  0x8b   :  { %1279 = vmatpush3.msra.mxu0 %v215_v3  ;;  %1314 = vmatpush3.msra.mxu1 %v309_v8  ;;  %v206_v21 = vld [vmem:[#allocation5 + $0x20] sm:$0xff]  ;;  %v302_v22 = vld [vmem:[#allocation7 + $0x30] sm:$0xff]  ;;  %v205_v23 = vld [vmem:[#allocation5 + $0x18] sm:$0xff] }
  0x8c   :  { %1280 = vmatprep.subr.mxu0 %v1898_v0  ;;  %1315 = vmatprep.subr.mxu1 %v1898_v0  ;;  %v301_v24 = vld [vmem:[#allocation7 + $0x28] sm:$0xff]  ;;  %v204_v25 = vld [vmem:[#allocation5 + $0x10] sm:$0xff]  ;;  %v300_v26 = vld [vmem:[#allocation7 + $0x20] sm:$0xff] }
  0x8d   :  { %1281 = vmatpush3.msra.mxu0 %v214_v4  ;;  %1316 = vmatpush3.msra.mxu1 %v308_v10  ;;  %v203_v27 = vld [vmem:[#allocation5 + $0x8] sm:$0xff]  ;;  %v299_v28 = vld [vmem:[#allocation7 + $0x18] sm:$0xff]  ;;  %v202_v29 = vld [vmem:[#allocation5] sm:$0xff] }
  0x8e   :  { %1282 = vmatprep.subr.mxu0 %v1898_v0  ;;  %1317 = vmatprep.subr.mxu1 %v1898_v0  ;;  %v201_v30 = vld [vmem:[#allocation2] sm:$0xff]  ;;  %v298_v31 = vld [vmem:[#allocation7 + $0x10] sm:$0xff]  ;;  %v297_v32 = vld [vmem:[#allocation7 + $0x8] sm:$0xff] }
  0x8f   :  { %1283 = vmatpush3.msra.mxu0 %v213_v6  ;;  %1318 = vmatpush3.msra.mxu1 %v307_v12  ;;  %v296_v33 = vld [vmem:[#allocation7] sm:$0xff]  ;;  %v405_v34 = vld [vmem:[#allocation8 + $0x78] sm:$0xff]  ;;  %v404_v35 = vld [vmem:[#allocation8 + $0x70] sm:$0xff] }
  0x90   :  { %1284 = vmatprep.subr.mxu0 %v1898_v0  ;;  %1319 = vmatprep.subr.mxu1 %v1898_v0  ;;  %v403_v36 = vld [vmem:[#allocation8 + $0x68] sm:$0xff]  ;;  %v402_v37 = vld [vmem:[#allocation8 + $0x60] sm:$0xff]  ;;  %v401_v38 = vld [vmem:[#allocation8 + $0x58] sm:$0xff] }
  0x91   :  { %1285 = vmatpush3.msra.mxu0 %v212_v9  ;;  %1320 = vmatpush3.msra.mxu1 %v306_v14  ;;  %v400_v39 = vld [vmem:[#allocation8 + $0x50] sm:$0xff]  ;;  %v399_v40 = vld [vmem:[#allocation8 + $0x48] sm:$0xff]  ;;  %v398_v41 = vld [vmem:[#allocation8 + $0x40] sm:$0xff] }
  0x92   :  { %1286 = vmatprep.subr.mxu0 %v1898_v0  ;;  %1321 = vmatprep.subr.mxu1 %v1898_v0  ;;  %v397_v42 = vld [vmem:[#allocation8 + $0x38] sm:$0xff]  ;;  %v396_v43 = vld [vmem:[#allocation8 + $0x30] sm:$0xff]  ;;  %v395_v44 = vld [vmem:[#allocation8 + $0x28] sm:$0xff] }
  0x93   :  { %1287 = vmatpush3.msra.mxu0 %v211_v11  ;;  %1322 = vmatpush3.msra.mxu1 %v305_v16  ;;  %v394_v45 = vld [vmem:[#allocation8 + $0x20] sm:$0xff]  ;;  %v393_v46 = vld [vmem:[#allocation8 + $0x18] sm:$0xff]  ;;  %v392_v52 = vld [vmem:[#allocation8 + $0x10] sm:$0xff] }
  0x94   :  { %1288 = vmatprep.subr.mxu0 %v1898_v0  ;;  %1323 = vmatprep.subr.mxu1 %v1898_v0  ;;  %v1112_v47 = vld [vmem:[%s2307_s27] ss:$0 sm:$0xff]  ;;  %v391_v53 = vld [vmem:[#allocation8 + $0x8] sm:$0xff]  ;;  %v390_v54 = vld [vmem:[#allocation8] sm:$0xff] }
  0x95   :  { %1289 = vmatpush3.msra.mxu0 %v210_v13  ;;  %1324 = vmatpush3.msra.mxu1 %v304_v18  ;;  %v499_v55 = vld [vmem:[#allocation10 + $0x78] sm:$0xff]  ;;  %v498_v56 = vld [vmem:[#allocation10 + $0x70] sm:$0xff]  ;;  %v497_v57 = vld [vmem:[#allocation10 + $0x68] sm:$0xff] }
  0x96   :  { %1290 = vmatprep.subr.mxu0 %v1898_v0  ;;  %1325 = vmatprep.subr.mxu1 %v1898_v0  ;;  %v496_v58 = vld [vmem:[#allocation10 + $0x60] sm:$0xff]  ;;  %v495_v59 = vld [vmem:[#allocation10 + $0x58] sm:$0xff]  ;;  %v494_v60 = vld [vmem:[#allocation10 + $0x50] sm:$0xff] }
  0x97   :  { %1291 = vmatpush3.msra.mxu0 %v209_v15  ;;  %1326 = vmatpush3.msra.mxu1 %v303_v20  ;;  %v493_v61 = vld [vmem:[#allocation10 + $0x48] sm:$0xff]  ;;  %v492_v62 = vld [vmem:[#allocation10 + $0x40] sm:$0xff]  ;;  %v491_v63 = vld [vmem:[#allocation10 + $0x38] sm:$0xff] }
  0x98   :  { %1292 = vmatprep.subr.mxu0 %v1898_v0  ;;  %1327 = vmatprep.subr.mxu1 %v1898_v0  ;;  %v490_v1 = vld [vmem:[#allocation10 + $0x30] sm:$0xff]  ;;  %v489_v2 = vld [vmem:[#allocation10 + $0x28] sm:$0xff]  ;;  %v488_v3 = vld [vmem:[#allocation10 + $0x20] sm:$0xff] }
  0x99   :  { %1293 = vmatpush3.msra.mxu0 %v208_v17  ;;  %1328 = vmatpush3.msra.mxu1 %v302_v22  ;;  %v487_v4 = vld [vmem:[#allocation10 + $0x18] sm:$0xff]  ;;  %v486_v10 = vld [vmem:[#allocation10 + $0x10] sm:$0xff]  ;;  %v485_v11 = vld [vmem:[#allocation10 + $0x8] sm:$0xff] }
  0x9a   :  { %1294 = vmatprep.subr.mxu0 %v1898_v0  ;;  %1329 = vmatprep.subr.mxu1 %v1898_v0  ;;  %v1113_v5 = vld [vmem:[%s2308_s1] ss:$0 sm:$0xff]  ;;  %v484_v12 = vld [vmem:[#allocation10] sm:$0xff]  ;;  %v591_v14 = vld [vmem:[#allocation11 + $0x70] sm:$0xff] }
  0x9b   :  { %1295 = vmatpush3.msra.mxu0 %v207_v19  ;;  %1330 = vmatpush3.msra.mxu1 %v301_v24  ;;  %v592_v13 = vld [vmem:[#allocation11 + $0x78] sm:$0xff]  ;;  %v590_v15 = vld [vmem:[#allocation11 + $0x68] sm:$0xff]  ;;  %v589_v16 = vld [vmem:[#allocation11 + $0x60] sm:$0xff] }
  0x9c   :  { %1296 = vmatprep.subr.mxu0 %v1898_v0  ;;  %1331 = vmatprep.subr.mxu1 %v1898_v0  ;;  %v588_v17 = vld [vmem:[#allocation11 + $0x58] sm:$0xff]  ;;  %v587_v18 = vld [vmem:[#allocation11 + $0x50] sm:$0xff]  ;;  %v586_v19 = vld [vmem:[#allocation11 + $0x48] sm:$0xff] }
  0x9d   :  { %1297 = vmatpush3.msra.mxu0 %v206_v21  ;;  %1332 = vmatpush3.msra.mxu1 %v300_v26  ;;  %v585_v20 = vld [vmem:[#allocation11 + $0x40] sm:$0xff]  ;;  %v584_v21 = vld [vmem:[#allocation11 + $0x38] sm:$0xff]  ;;  %v583_v22 = vld [vmem:[#allocation11 + $0x30] sm:$0xff] }
  0x9e   :  { %1298 = vmatprep.subr.mxu0 %v1898_v0  ;;  %1333 = vmatprep.subr.mxu1 %v1898_v0  ;;  %v581_v24 = vld [vmem:[#allocation11 + $0x20] sm:$0xff]  ;;  %v579_v26 = vld [vmem:[#allocation11 + $0x10] sm:$0xff] }
  0x9f   :  { %1299 = vmatpush3.msra.mxu0 %v205_v23  ;;  %1334 = vmatpush3.msra.mxu1 %v299_v28  ;;  %v582_v23 = vld [vmem:[#allocation11 + $0x28] sm:$0xff] }
  0xa0   :  { %1300 = vmatprep.subr.mxu0 %v1898_v0  ;;  %1335 = vmatprep.subr.mxu1 %v1898_v0 }
  0xa1   :  { %1301 = vmatpush3.msra.mxu0 %v204_v25  ;;  %1336 = vmatpush3.msra.mxu1 %v298_v31  ;;  %v580_v25 = vld [vmem:[#allocation11 + $0x18] sm:$0xff] }
  0xa2   :  { %1302 = vmatprep.subr.mxu0 %v1898_v0  ;;  %1337 = vmatprep.subr.mxu1 %v1898_v0 }
  0xa3   :  { %1303 = vmatpush3.msra.mxu0 %v203_v27  ;;  %1338 = vmatpush3.msra.mxu1 %v297_v32  ;;  %v1114_v27 = vld [vmem:[%s2281_s6] ss:$0 sm:$0xff]  ;;  %v578_v32 = vld [vmem:[#allocation11 + $0x8] sm:$0xff] }
  0xa4   :  { %1304 = vmatprep.subr.mxu0 %v1898_v0  ;;  %1339 = vmatprep.subr.mxu1 %v1898_v0 }
  0xa5   :  { %1305 = vmatpush3.msra.mxu0 %v202_v29  ;;  %1340 = vmatpush3.msra.mxu1 %v296_v33  ;;  %v577_v33 = vld [vmem:[#allocation11] sm:$0xff] }
  0xa6   :  { %1307 = vmatmul.mubr.f32.vlgmr.msra.gmra.mxu0 %v201_v30  ;;  %1344 = vmatprep.subr.mxu0 %v1898_v0 }
  0xa7   :  { %1376 = vmatprep.mubr.msk.f32.mxu0 %vm1899_vm0, %v1898_v0  ;;  %1379 = vmatprep.subr.mxu1 %v1898_v0 }
  0xa8   :  { %1345 = vmatpush3.msra.mxu0 %v405_v34  ;;  %v1115_v34 = vld [vmem:[%s2283_s8] ss:$0 sm:$0xff] }
  0xa9   :  { %1346 = vmatprep.subr.mxu0 %v1898_v0 }
  0xaa   :  { %1347 = vmatpush3.msra.mxu0 %v404_v35 }
  0xab   :  { %1348 = vmatprep.subr.mxu0 %v1898_v0 }
  0xac   :  { %1349 = vmatpush3.msra.mxu0 %v403_v36 }
  0xad   :  { %1350 = vmatprep.subr.mxu0 %v1898_v0 }
  0xae   :  { %1351 = vmatpush3.msra.mxu0 %v402_v37 }
  0xaf   :  { %1352 = vmatprep.subr.mxu0 %v1898_v0 }
  0xb0   :  { %1353 = vmatpush3.msra.mxu0 %v401_v38 }
  0xb1   :  { %1354 = vmatprep.subr.mxu0 %v1898_v0 }
  0xb2   :  { %1355 = vmatpush3.msra.mxu0 %v400_v39  ;;  %v686_v39 = vld [vmem:[#allocation13 + $0x78] sm:$0xff] }
  0xb3   :  { %1356 = vmatprep.subr.mxu0 %v1898_v0 }
  0xb4   :  { %1357 = vmatpush3.msra.mxu0 %v399_v40  ;;  %v685_v40 = vld [vmem:[#allocation13 + $0x70] sm:$0xff] }
  0xb5   :  { %1358 = vmatprep.subr.mxu0 %v1898_v0 }
  0xb6   :  { %1359 = vmatpush3.msra.mxu0 %v398_v41  ;;  %v684_v41 = vld [vmem:[#allocation13 + $0x68] sm:$0xff] }
  0xb7   :  { %1360 = vmatprep.subr.mxu0 %v1898_v0 }
  0xb8   :  { %1361 = vmatpush3.msra.mxu0 %v397_v42  ;;  %v683_v42 = vld [vmem:[#allocation13 + $0x60] sm:$0xff] }
  0xb9   :  { %1362 = vmatprep.subr.mxu0 %v1898_v0 }
  0xba   :  { %1363 = vmatpush3.msra.mxu0 %v396_v43  ;;  %v682_v43 = vld [vmem:[#allocation13 + $0x58] sm:$0xff] }
  0xbb   :  { %1364 = vmatprep.subr.mxu0 %v1898_v0 }
  0xbc   :  { %1365 = vmatpush3.msra.mxu0 %v395_v44  ;;  %v681_v44 = vld [vmem:[#allocation13 + $0x50] sm:$0xff] }
  0xbd   :  { %1366 = vmatprep.subr.mxu0 %v1898_v0 }
  0xbe   :  { %1367 = vmatpush3.msra.mxu0 %v394_v45  ;;  %v680_v45 = vld [vmem:[#allocation13 + $0x48] sm:$0xff] }
  0xbf   :  { %1368 = vmatprep.subr.mxu0 %v1898_v0 }
  0xc0   :  { %1369 = vmatpush3.msra.mxu0 %v393_v46  ;;  %v679_v46 = vld [vmem:[#allocation13 + $0x40] sm:$0xff] }
  0xc1   :  { %1370 = vmatprep.subr.mxu0 %v1898_v0 }
  0xc2   :  { %1371 = vmatpush3.msra.mxu0 %v392_v52  ;;  %v673_v52 = vld [vmem:[#allocation13 + $0x10] sm:$0xff] }
  0xc3   :  { %1372 = vmatprep.subr.mxu0 %v1898_v0 }
  0xc4   :  { %1373 = vmatpush3.msra.mxu0 %v391_v53  ;;  %v672_v53 = vld [vmem:[#allocation13 + $0x8] sm:$0xff] }
  0xc5   :  { %1374 = vmatprep.subr.mxu0 %v1898_v0 }
  0xc6   :  { %1375 = vmatpush3.msra.mxu0 %v390_v54  ;;  %v671_v54 = vld [vmem:[#allocation13] sm:$0xff] }
  0xc7   :  { %1414 = vmatprep.subr.mxu0 %v1898_v0 }
 0x166   :  { %v291_v48 = vpop.f32.mrf.mxu0 }
 0x167   :  { %v292_v49 = vadd.f32 %v1112_v47, %v291_v48  ;;  %v678_v47 = vld [vmem:[#allocation13 + $0x38] sm:$0xff]  ;;  %v677_v48 = vld [vmem:[#allocation13 + $0x30] sm:$0xff] }
 0x168   :  { %v1308_v50 = vpop.f32.mrf.mxu0 }
 0x169   :  { %v295_v51 = vmax.f32 %v292_v49, 0.0  ;;  %v676_v49 = vld [vmem:[#allocation13 + $0x28] sm:$0xff]  ;;  %v675_v50 = vld [vmem:[#allocation13 + $0x20] sm:$0xff] }
 0x16b   :  { %1342 = vmatmul.mubr.f32.vlgmr.msra.gmra.mxu1 %v295_v51  ;;  %v674_v51 = vld [vmem:[#allocation13 + $0x18] sm:$0xff] }
 0x16c   :  { %1411 = vmatprep.mubr.msk.f32.mxu1 %vm1899_vm0, %v1898_v0  ;;  %1380 = vmatpush3.msra.mxu1 %v499_v55  ;;  %v780_v55 = vld [vmem:[#allocation14 + $0x78] sm:$0xff] }
 0x16d   :  { %1381 = vmatprep.subr.mxu1 %v1898_v0 }
 0x16e   :  { %1382 = vmatpush3.msra.mxu1 %v498_v56  ;;  %v779_v56 = vld [vmem:[#allocation14 + $0x70] sm:$0xff] }
 0x16f   :  { %1383 = vmatprep.subr.mxu1 %v1898_v0 }
 0x170   :  { %1384 = vmatpush3.msra.mxu1 %v497_v57  ;;  %v778_v57 = vld [vmem:[#allocation14 + $0x68] sm:$0xff] }
 0x171   :  { %1385 = vmatprep.subr.mxu1 %v1898_v0 }
 0x172   :  { %1386 = vmatpush3.msra.mxu1 %v496_v58  ;;  %v777_v58 = vld [vmem:[#allocation14 + $0x60] sm:$0xff] }
 0x173   :  { %1387 = vmatprep.subr.mxu1 %v1898_v0 }
 0x174   :  { %1388 = vmatpush3.msra.mxu1 %v495_v59  ;;  %v776_v59 = vld [vmem:[#allocation14 + $0x58] sm:$0xff] }
 0x175   :  { %1389 = vmatprep.subr.mxu1 %v1898_v0 }
 0x176   :  { %1390 = vmatpush3.msra.mxu1 %v494_v60  ;;  %v775_v60 = vld [vmem:[#allocation14 + $0x50] sm:$0xff] }
 0x177   :  { %1391 = vmatprep.subr.mxu1 %v1898_v0 }
 0x178   :  { %1392 = vmatpush3.msra.mxu1 %v493_v61  ;;  %v774_v61 = vld [vmem:[#allocation14 + $0x48] sm:$0xff] }
 0x179   :  { %1393 = vmatprep.subr.mxu1 %v1898_v0 }
 0x17a   :  { %1394 = vmatpush3.msra.mxu1 %v492_v62  ;;  %v773_v62 = vld [vmem:[#allocation14 + $0x40] sm:$0xff] }
 0x17b   :  { %1395 = vmatprep.subr.mxu1 %v1898_v0 }
 0x17c   :  { %1396 = vmatpush3.msra.mxu1 %v491_v63  ;;  %v772_v63 = vld [vmem:[#allocation14 + $0x38] sm:$0xff] }
 0x17d   :  { %1397 = vmatprep.subr.mxu1 %v1898_v0 }
 0x17e   :  { %1398 = vmatpush3.msra.mxu1 %v490_v1  ;;  %v771_v1 = vld [vmem:[#allocation14 + $0x30] sm:$0xff] }
 0x17f   :  { %1399 = vmatprep.subr.mxu1 %v1898_v0 }
 0x180   :  { %1400 = vmatpush3.msra.mxu1 %v489_v2  ;;  %v770_v2 = vld [vmem:[#allocation14 + $0x28] sm:$0xff] }
 0x181   :  { %1401 = vmatprep.subr.mxu1 %v1898_v0 }
 0x182   :  { %1402 = vmatpush3.msra.mxu1 %v488_v3  ;;  %v769_v3 = vld [vmem:[#allocation14 + $0x20] sm:$0xff] }
 0x183   :  { %1403 = vmatprep.subr.mxu1 %v1898_v0 }
 0x184   :  { %1404 = vmatpush3.msra.mxu1 %v487_v4  ;;  %v768_v4 = vld [vmem:[#allocation14 + $0x18] sm:$0xff] }
 0x185   :  { %1405 = vmatprep.subr.mxu1 %v1898_v0 }
 0x186   :  { %1406 = vmatpush3.msra.mxu1 %v486_v10 }
 0x187   :  { %1407 = vmatprep.subr.mxu1 %v1898_v0 }
 0x188   :  { %1408 = vmatpush3.msra.mxu1 %v485_v11  ;;  %v766_v11 = vld [vmem:[#allocation14 + $0x8] sm:$0xff] }
 0x189   :  { %1409 = vmatprep.subr.mxu1 %v1898_v0 }
 0x18a   :  { %1410 = vmatpush3.msra.mxu1 %v484_v12  ;;  %v765_v12 = vld [vmem:[#allocation14] sm:$0xff] }
 0x18b   :  { %1449 = vmatprep.subr.mxu1 %v1898_v0 }
 0x22b   :  { %v385_v6 = vpop.f32.mrf.mxu1 }
 0x22c   :  { %v386_v7 = vadd.f32 %v1113_v5, %v385_v6  ;;  %v767_v5 = vld [vmem:[#allocation14 + $0x10] sm:$0xff]  ;;  %v1116_v6 = vld [vmem:[%s2285_s10] ss:$0 sm:$0xff] }
 0x22d   :  { %v1343_v8 = vpop.f32.mrf.mxu1 }
 0x22e   :  { %v389_v9 = vmax.f32 %v386_v7, 0.0 }
 0x230   :  { %1377 = vmatmul.mubr.f32.vlgmr.msra.gmra.mxu0 %v389_v9 }
 0x231   :  { %1446 = vmatprep.mubr.msk.f32.mxu0 %vm1899_vm0, %v1898_v0  ;;  %1415 = vmatpush3.msra.mxu0 %v592_v13  ;;  %v874_v13 = vld [vmem:[#allocation16 + $0x78] sm:$0xff] }
 0x232   :  { %1416 = vmatprep.subr.mxu0 %v1898_v0 }
 0x233   :  { %1417 = vmatpush3.msra.mxu0 %v591_v14  ;;  %v873_v14 = vld [vmem:[#allocation16 + $0x70] sm:$0xff] }
 0x234   :  { %1418 = vmatprep.subr.mxu0 %v1898_v0 }
 0x235   :  { %1419 = vmatpush3.msra.mxu0 %v590_v15  ;;  %v872_v15 = vld [vmem:[#allocation16 + $0x68] sm:$0xff] }
 0x236   :  { %1420 = vmatprep.subr.mxu0 %v1898_v0 }
 0x237   :  { %1421 = vmatpush3.msra.mxu0 %v589_v16  ;;  %v871_v16 = vld [vmem:[#allocation16 + $0x60] sm:$0xff] }
 0x238   :  { %1422 = vmatprep.subr.mxu0 %v1898_v0 }
 0x239   :  { %1423 = vmatpush3.msra.mxu0 %v588_v17  ;;  %v870_v17 = vld [vmem:[#allocation16 + $0x58] sm:$0xff] }
 0x23a   :  { %1424 = vmatprep.subr.mxu0 %v1898_v0 }
 0x23b   :  { %1425 = vmatpush3.msra.mxu0 %v587_v18  ;;  %v869_v18 = vld [vmem:[#allocation16 + $0x50] sm:$0xff] }
 0x23c   :  { %1426 = vmatprep.subr.mxu0 %v1898_v0 }
 0x23d   :  { %1427 = vmatpush3.msra.mxu0 %v586_v19  ;;  %v868_v19 = vld [vmem:[#allocation16 + $0x48] sm:$0xff] }
 0x23e   :  { %1428 = vmatprep.subr.mxu0 %v1898_v0 }
 0x23f   :  { %1429 = vmatpush3.msra.mxu0 %v585_v20  ;;  %v867_v20 = vld [vmem:[#allocation16 + $0x40] sm:$0xff] }
 0x240   :  { %1430 = vmatprep.subr.mxu0 %v1898_v0 }
 0x241   :  { %1431 = vmatpush3.msra.mxu0 %v584_v21  ;;  %v866_v21 = vld [vmem:[#allocation16 + $0x38] sm:$0xff] }
 0x242   :  { %1432 = vmatprep.subr.mxu0 %v1898_v0 }
 0x243   :  { %1433 = vmatpush3.msra.mxu0 %v583_v22  ;;  %v865_v22 = vld [vmem:[#allocation16 + $0x30] sm:$0xff] }
 0x244   :  { %1434 = vmatprep.subr.mxu0 %v1898_v0 }
 0x245   :  { %1435 = vmatpush3.msra.mxu0 %v582_v23  ;;  %v864_v23 = vld [vmem:[#allocation16 + $0x28] sm:$0xff] }
 0x246   :  { %1436 = vmatprep.subr.mxu0 %v1898_v0 }
 0x247   :  { %1437 = vmatpush3.msra.mxu0 %v581_v24  ;;  %v863_v24 = vld [vmem:[#allocation16 + $0x20] sm:$0xff] }
 0x248   :  { %1438 = vmatprep.subr.mxu0 %v1898_v0 }
 0x249   :  { %1439 = vmatpush3.msra.mxu0 %v580_v25  ;;  %v862_v25 = vld [vmem:[#allocation16 + $0x18] sm:$0xff] }
 0x24a   :  { %1440 = vmatprep.subr.mxu0 %v1898_v0 }
 0x24b   :  { %1441 = vmatpush3.msra.mxu0 %v579_v26  ;;  %v1117_v26 = vld [vmem:[%s2287_s12] ss:$0 sm:$0xff] }
 0x24c   :  { %1442 = vmatprep.subr.mxu0 %v1898_v0 }
 0x24d   :  { %1443 = vmatpush3.msra.mxu0 %v578_v32  ;;  %v966_v32 = vld [vmem:[#allocation17 + $0x70] sm:$0xff] }
 0x24e   :  { %1444 = vmatprep.subr.mxu0 %v1898_v0 }
 0x24f   :  { %1445 = vmatpush3.msra.mxu0 %v577_v33  ;;  %v965_v33 = vld [vmem:[#allocation17 + $0x68] sm:$0xff] }
 0x250   :  { %1484 = vmatprep.subr.mxu0 %v1898_v0 }
 0x2f0   :  { %v479_v28 = vpop.f32.mrf.mxu0 }
 0x2f1   :  { %v480_v29 = vadd.f32 %v1114_v27, %v479_v28 }
 0x2f2   :  { %v1378_v30 = vpop.f32.mrf.mxu0 }
 0x2f3   :  { %v483_v31 = vmax.f32 %v480_v29, 0.0 }
 0x2f5   :  { %1412 = vmatmul.mubr.f32.vlgmr.msra.gmra.mxu1 %v483_v31  ;;  %v967_v31 = vld [vmem:[#allocation17 + $0x78] sm:$0xff] }
 0x2f6   :  { %1481 = vmatprep.mubr.msk.f32.mxu1 %vm1899_vm0, %v1898_v0  ;;  %1450 = vmatpush3.msra.mxu1 %v686_v39  ;;  %v960_v39 = vld [vmem:[#allocation17 + $0x40] sm:$0xff] }
 0x2f7   :  { %1451 = vmatprep.subr.mxu1 %v1898_v0 }
 0x2f8   :  { %1452 = vmatpush3.msra.mxu1 %v685_v40  ;;  %v959_v40 = vld [vmem:[#allocation17 + $0x38] sm:$0xff] }
 0x2f9   :  { %1453 = vmatprep.subr.mxu1 %v1898_v0 }
 0x2fa   :  { %1454 = vmatpush3.msra.mxu1 %v684_v41  ;;  %v958_v41 = vld [vmem:[#allocation17 + $0x30] sm:$0xff] }
 0x2fb   :  { %1455 = vmatprep.subr.mxu1 %v1898_v0 }
 0x2fc   :  { %1456 = vmatpush3.msra.mxu1 %v683_v42  ;;  %v957_v42 = vld [vmem:[#allocation17 + $0x28] sm:$0xff] }
 0x2fd   :  { %1457 = vmatprep.subr.mxu1 %v1898_v0 }
 0x2fe   :  { %1458 = vmatpush3.msra.mxu1 %v682_v43  ;;  %v956_v43 = vld [vmem:[#allocation17 + $0x20] sm:$0xff] }
 0x2ff   :  { %1459 = vmatprep.subr.mxu1 %v1898_v0 }
 0x300   :  { %1460 = vmatpush3.msra.mxu1 %v681_v44  ;;  %v955_v44 = vld [vmem:[#allocation17 + $0x18] sm:$0xff] }
 0x301   :  { %1461 = vmatprep.subr.mxu1 %v1898_v0 }
 0x302   :  { %1462 = vmatpush3.msra.mxu1 %v680_v45  ;;  %v954_v45 = vld [vmem:[#allocation17 + $0x10] sm:$0xff] }
 0x303   :  { %1463 = vmatprep.subr.mxu1 %v1898_v0 }
 0x304   :  { %1464 = vmatpush3.msra.mxu1 %v679_v46  ;;  %v953_v46 = vld [vmem:[#allocation17 + $0x8] sm:$0xff] }
 0x305   :  { %1465 = vmatprep.subr.mxu1 %v1898_v0 }
 0x306   :  { %1466 = vmatpush3.msra.mxu1 %v678_v47  ;;  %v952_v47 = vld [vmem:[#allocation17] sm:$0xff] }
 0x307   :  { %1467 = vmatprep.subr.mxu1 %v1898_v0 }
 0x308   :  { %1468 = vmatpush3.msra.mxu1 %v677_v48  ;;  %v861_v48 = vld [vmem:[#allocation16 + $0x10] sm:$0xff] }
 0x309   :  { %1469 = vmatprep.subr.mxu1 %v1898_v0 }
 0x30a   :  { %1470 = vmatpush3.msra.mxu1 %v676_v49  ;;  %v860_v49 = vld [vmem:[#allocation16 + $0x8] sm:$0xff] }
 0x30b   :  { %1471 = vmatprep.subr.mxu1 %v1898_v0 }
 0x30c   :  { %1472 = vmatpush3.msra.mxu1 %v675_v50  ;;  %v859_v50 = vld [vmem:[#allocation16] sm:$0xff] }
 0x30d   :  { %1473 = vmatprep.subr.mxu1 %v1898_v0 }
 0x30e   :  { %1474 = vmatpush3.msra.mxu1 %v674_v51  ;;  %v1118_v51 = vld [vmem:[%s2289_s14] ss:$0 sm:$0xff]  ;;  %s1900_s14 = smov [#allocation20]  }
 0x30f   :  { %1475 = vmatprep.subr.mxu1 %v1898_v0  ;;  %s1081_s29 = sshll.u32 %s1900_s14, 4  ;;  %s1082_s29 = int_to_ptr.vmem [resolvable:$true] %s1081_s29 }
 0x310   :  { %1476 = vmatpush3.msra.mxu1 %v673_v52  ;;  %s1810_s4 = scalar_lea.vmem %s1082_s29, 128  ;;  %p1815_p9 = scmp.lt.s32.totalorder %s1082_s29, %s1082_s29 }
 0x311   :  { %1477 = vmatprep.subr.mxu1 %v1898_v0  ;;  %p1811_p8 = scmp.ne.s32.totalorder %s1082_s29, %s1810_s4  ;;  %p1816_p10 = scmp.lt.s32.totalorder %s1810_s4, %s1810_s4 }
 0x312   :  { %1478 = vmatpush3.msra.mxu1 %v672_v53 }
 0x313   :  { %1479 = vmatprep.subr.mxu1 %v1898_v0  ;;  %p1817_p11 = por %p1816_p10, %p1815_p9 }
 0x314   :  { %1480 = vmatpush3.msra.mxu1 %v671_v54 }
 0x315   :  { %1519 = vmatprep.subr.mxu1 %v1898_v0  ;;  %p1818_p12 = pnand %p1817_p11, %p1811_p8 }
 0x3b5   :  { %v573_v35 = vpop.f32.mrf.mxu1 }
 0x3b6   :  { %v2176_v36 = vadd.f32 %v1115_v34, %v573_v35  ;;  %v964_v34 = vld [vmem:[#allocation17 + $0x60] sm:$0xff]  ;;  %v963_v35 = vld [vmem:[#allocation17 + $0x58] sm:$0xff] }
 0x3b7   :  { %v1413_v37 = vpop.f32.mrf.mxu1 }
 0x3b8   :  { %1063 = vst [vmem:[#allocation20] sm:$0xff] %v2176_v36  ;;  %1447 = vmatmul.mubr.f32.vlgmr.msra.gmra.mxu0 %v2176_v36  ;;  %v968_v38 = vmul.f32 %v2176_v36, %v2176_v36  ;;  %v962_v37 = vld [vmem:[#allocation17 + $0x50] sm:$0xff] }
 0x3b9   :  { %1516 = vmatprep.mubr.msk.f32.mxu0 %vm1899_vm0, %v1898_v0  ;;  %1485 = vmatpush3.msra.mxu0 %v780_v55 }
 0x3ba   :  { %969 = vadd.xlane.f32.xlu0 %v968_v38  ;;  %1486 = vmatprep.subr.mxu0 %v1898_v0  ;;  %v961_v38 = vld [vmem:[#allocation17 + $0x48] sm:$0xff] }
 0x3bb   :  { %1487 = vmatpush3.msra.mxu0 %v779_v56 }
 0x3bc   :  { %1488 = vmatprep.subr.mxu0 %v1898_v0 }
 0x3bd   :  { %1489 = vmatpush3.msra.mxu0 %v778_v57 }
 0x3be   :  { %1490 = vmatprep.subr.mxu0 %v1898_v0 }
 0x3bf   :  { %1491 = vmatpush3.msra.mxu0 %v777_v58 }
 0x3c0   :  { %1492 = vmatprep.subr.mxu0 %v1898_v0 }
 0x3c1   :  { %1493 = vmatpush3.msra.mxu0 %v776_v59 }
 0x3c2   :  { %1494 = vmatprep.subr.mxu0 %v1898_v0 }
 0x3c3   :  { %1495 = vmatpush3.msra.mxu0 %v775_v60 }
 0x3c4   :  { %1496 = vmatprep.subr.mxu0 %v1898_v0 }
 0x3c5   :  { %1497 = vmatpush3.msra.mxu0 %v774_v61 }
 0x3c6   :  { %1498 = vmatprep.subr.mxu0 %v1898_v0 }
 0x3c7   :  { %1499 = vmatpush3.msra.mxu0 %v773_v62 }
 0x3c8   :  { %1500 = vmatprep.subr.mxu0 %v1898_v0 }
 0x3c9   :  { %1501 = vmatpush3.msra.mxu0 %v772_v63  ;;  %v1054_v63 = vlaneseq }
 0x3ca   :  { %1502 = vmatprep.subr.mxu0 %v1898_v0 }
 0x3cb   :  { %1503 = vmatpush3.msra.mxu0 %v771_v1  ;;  %v1055_v1 = vand.u32 127, %v1054_v63 }
 0x3cc   :  { %1504 = vmatprep.subr.mxu0 %v1898_v0 }
 0x3cd   :  { %1505 = vmatpush3.msra.mxu0 %v770_v2  ;;  %vm1056_vm1 = vcmp.lt.s32.totalorder %v1055_v1, 4 }
 0x3ce   :  { %1506 = vmatprep.subr.mxu0 %v1898_v0 }
 0x3cf   :  { %1507 = vmatpush3.msra.mxu0 %v769_v3 }
 0x3d0   :  { %1508 = vmatprep.subr.mxu0 %v1898_v0 }
 0x3d1   :  { %1509 = vmatpush3.msra.mxu0 %v768_v4 }
 0x3d2   :  { %1510 = vmatprep.subr.mxu0 %v1898_v0 }
 0x3d3   :  { %1511 = vmatpush3.msra.mxu0 %v767_v5 }
 0x3d4   :  { %1512 = vmatprep.subr.mxu0 %v1898_v0 }
 0x3d5   :  { %1513 = vmatpush3.msra.mxu0 %v766_v11 }
 0x3d6   :  { %1514 = vmatprep.subr.mxu0 %v1898_v0 }
 0x3d7   :  { %1515 = vmatpush3.msra.mxu0 %v765_v12 }
 0x3d8   :  { %1554 = vmatprep.subr.mxu0 %v1898_v0 }
 0x443   :  { %v970_v56 = vpop.xlane.xlu0 %969 }
 0x478   :  { %v666_v7 = vpop.f32.mrf.mxu0 }
 0x479   :  { %v667_v8 = vadd.f32 %v1116_v6, %v666_v7 }
 0x47a   :  { %v1448_v9 = vpop.f32.mrf.mxu0 }
 0x47b   :  { %v670_v10 = vmax.f32 %v667_v8, 0.0 }
 0x47d   :  { %1482 = vmatmul.mubr.f32.vlgmr.msra.gmra.mxu1 %v670_v10 }
 0x47e   :  { %1551 = vmatprep.mubr.msk.f32.mxu1 %vm1899_vm0, %v1898_v0  ;;  %1520 = vmatpush3.msra.mxu1 %v874_v13 }
 0x47f   :  { %1521 = vmatprep.subr.mxu1 %v1898_v0 }
 0x480   :  { %1522 = vmatpush3.msra.mxu1 %v873_v14 }
 0x481   :  { %1523 = vmatprep.subr.mxu1 %v1898_v0 }
 0x482   :  { %1524 = vmatpush3.msra.mxu1 %v872_v15 }
 0x483   :  { %1525 = vmatprep.subr.mxu1 %v1898_v0 }
 0x484   :  { %1526 = vmatpush3.msra.mxu1 %v871_v16 }
 0x485   :  { %1527 = vmatprep.subr.mxu1 %v1898_v0 }
 0x486   :  { %1528 = vmatpush3.msra.mxu1 %v870_v17 }
 0x487   :  { %1529 = vmatprep.subr.mxu1 %v1898_v0 }
 0x488   :  { %1530 = vmatpush3.msra.mxu1 %v869_v18 }
 0x489   :  { %1531 = vmatprep.subr.mxu1 %v1898_v0 }
 0x48a   :  { %1532 = vmatpush3.msra.mxu1 %v868_v19 }
 0x48b   :  { %1533 = vmatprep.subr.mxu1 %v1898_v0 }
 0x48c   :  { %1534 = vmatpush3.msra.mxu1 %v867_v20 }
 0x48d   :  { %1535 = vmatprep.subr.mxu1 %v1898_v0 }
 0x48e   :  { %1536 = vmatpush3.msra.mxu1 %v866_v21 }
 0x48f   :  { %1537 = vmatprep.subr.mxu1 %v1898_v0 }
 0x490   :  { %1538 = vmatpush3.msra.mxu1 %v865_v22 }
 0x491   :  { %1539 = vmatprep.subr.mxu1 %v1898_v0 }
 0x492   :  { %1540 = vmatpush3.msra.mxu1 %v864_v23 }
 0x493   :  { %1541 = vmatprep.subr.mxu1 %v1898_v0 }
 0x494   :  { %1542 = vmatpush3.msra.mxu1 %v863_v24 }
 0x495   :  { %1543 = vmatprep.subr.mxu1 %v1898_v0 }
 0x496   :  { %1544 = vmatpush3.msra.mxu1 %v862_v25 }
 0x497   :  { %1545 = vmatprep.subr.mxu1 %v1898_v0 }
 0x498   :  { %1546 = vmatpush3.msra.mxu1 %v861_v48 }
 0x499   :  { %1547 = vmatprep.subr.mxu1 %v1898_v0 }
 0x49a   :  { %1548 = vmatpush3.msra.mxu1 %v860_v49 }
 0x49b   :  { %1549 = vmatprep.subr.mxu1 %v1898_v0 }
 0x49c   :  { %1550 = vmatpush3.msra.mxu1 %v859_v50 }
 0x53d   :  { %v760_v27 = vpop.f32.mrf.mxu1 }
 0x53e   :  { %v761_v28 = vadd.f32 %v1117_v26, %v760_v27 }
 0x53f   :  { %v1483_v29 = vpop.f32.mrf.mxu1 }
 0x540   :  { %v764_v30 = vmax.f32 %v761_v28, 0.0 }
 0x542   :  { %1517 = vmatmul.mubr.f32.vlgmr.msra.gmra.mxu0 %v764_v30 }
 0x543   :  { %1555 = vmatpush3.msra.mxu0 %v967_v31  ;;  %1586 = vmatprep.mubr.msk.f32.mxu0 %vm1899_vm0, %v1898_v0 }
 0x544   :  { %1556 = vmatprep.subr.mxu0 %v1898_v0 }
 0x545   :  { %1557 = vmatpush3.msra.mxu0 %v966_v32 }
 0x546   :  { %1558 = vmatprep.subr.mxu0 %v1898_v0 }
 0x547   :  { %1559 = vmatpush3.msra.mxu0 %v965_v33 }
 0x548   :  { %1560 = vmatprep.subr.mxu0 %v1898_v0 }
 0x549   :  { %1561 = vmatpush3.msra.mxu0 %v964_v34 }
 0x54a   :  { %1562 = vmatprep.subr.mxu0 %v1898_v0 }
 0x54b   :  { %1563 = vmatpush3.msra.mxu0 %v963_v35 }
 0x54c   :  { %1564 = vmatprep.subr.mxu0 %v1898_v0 }
 0x54d   :  { %1565 = vmatpush3.msra.mxu0 %v962_v37 }
 0x54e   :  { %1566 = vmatprep.subr.mxu0 %v1898_v0 }
 0x54f   :  { %1567 = vmatpush3.msra.mxu0 %v961_v38 }
 0x550   :  { %1568 = vmatprep.subr.mxu0 %v1898_v0 }
 0x551   :  { %1569 = vmatpush3.msra.mxu0 %v960_v39 }
 0x552   :  { %1570 = vmatprep.subr.mxu0 %v1898_v0 }
 0x553   :  { %1571 = vmatpush3.msra.mxu0 %v959_v40 }
 0x554   :  { %1572 = vmatprep.subr.mxu0 %v1898_v0 }
 0x555   :  { %1573 = vmatpush3.msra.mxu0 %v958_v41 }
 0x556   :  { %1574 = vmatprep.subr.mxu0 %v1898_v0 }
 0x557   :  { %1575 = vmatpush3.msra.mxu0 %v957_v42 }
 0x558   :  { %1576 = vmatprep.subr.mxu0 %v1898_v0 }
 0x559   :  { %1577 = vmatpush3.msra.mxu0 %v956_v43 }
 0x55a   :  { %1578 = vmatprep.subr.mxu0 %v1898_v0 }
 0x55b   :  { %1579 = vmatpush3.msra.mxu0 %v955_v44 }
 0x55c   :  { %1580 = vmatprep.subr.mxu0 %v1898_v0 }
 0x55d   :  { %1581 = vmatpush3.msra.mxu0 %v954_v45 }
 0x55e   :  { %1582 = vmatprep.subr.mxu0 %v1898_v0 }
 0x55f   :  { %1583 = vmatpush3.msra.mxu0 %v953_v46 }
 0x560   :  { %1584 = vmatprep.subr.mxu0 %v1898_v0 }
 0x561   :  { %1585 = vmatpush3.msra.mxu0 %v952_v47 }
 0x562   :  { %1587 = vmatmul.mubr.f32.vlgmr.msra.gmra.mxu0 %v2176_v36  ;;  %v1120_v36 = vld [vmem:[%s2293_s18] ss:$0 sm:$0xff] }
 0x563   :  { %v1048_v58 = vadd.f32 %v1120_v36, %v970_v56 }
 0x602   :  { %v854_v52 = vpop.f32.mrf.mxu0 }
 0x603   :  { %v855_v53 = vadd.f32 %v1118_v51, %v854_v52 }
 0x604   :  { %v1518_v54 = vpop.f32.mrf.mxu0 }
 0x605   :  { %v858_v55 = vmax.f32 %v855_v53, 0.0 }
 0x607   :  { %1552 = vmatmul.mubr.f32.vlgmr.msra.gmra.mxu1 %v858_v55 }
 0x622   :  { %v1038_v57 = vpop.f32.mrf.mxu0 }
 0x623   :  { %v1049_v59 = vmul.f32 2.0, %v1038_v57 }
 0x624   :  { %v1588_v60 = vpop.f32.mrf.mxu0 }
 0x625   :  { %v1050_v0 = vsub.f32 %v1048_v58, %v1049_v59 }
 0x627   :  { %v1051_v61 = vmax.f32 %v1050_v0, 0.0 }
 0x629   :  { %v1052_v62 = vadd.f32 1.0, %v1051_v61 }
 0x62b   :  { %1606 = vrcp.f32 %v1052_v62 }
 0x638   :  { %v1607_v2 = vpop.eup %1606 }
 0x639   :  { %v1057_v3 = vsel %vm1056_vm1, %v1607_v2, 0.0 }
 0x63a   :  { %1058 = vadd.xlane.f32.xlu0 %v1057_v3 }
 0x63b   :  { %1821 = shalt.err (!%p1818_p12)
}
 0x63c   :  { %1084 = dma.vmem_to_hbm [thread:$0]  %s1082_s29, 128, %s2295_s20, [#allocation21]   ;;  %v1119_v5 = vld [vmem:[%s2291_s16] ss:$0 sm:$0xff] }
 0x63d   :  { %s1901_s11 = smov [#allocation19]  }
 0x63e   :  { %s1071_s30 = sshll.u32 %s1901_s11, 4  ;;  %s1072_s30 = int_to_ptr.vmem [resolvable:$true] %s1071_s30 }
 0x63f   :  { %s1830_s15 = scalar_lea.vmem %s1072_s30, 128  ;;  %p1835_p0 = scmp.lt.s32.totalorder %s1072_s30, %s1072_s30 }
 0x640   :  { %p1831_p13 = scmp.ne.s32.totalorder %s1072_s30, %s1830_s15  ;;  %p1836_p1 = scmp.lt.s32.totalorder %s1830_s15, %s1830_s15 }
 0x642   :  { %p1837_p2 = por %p1836_p1, %p1835_p0 }
 0x644   :  { %p1838_p3 = pnand %p1837_p2, %p1831_p13 }
 0x6c3   :  { %v1059_v4 = vpop.xlane.xlu0 %1058 }
 0x6c4   :  { %1608 = vrcp.f32 %v1059_v4 }
 0x6c7   :  { %v948_v6 = vpop.f32.mrf.mxu1 }
 0x6c8   :  { %v949_v7 = vadd.f32 %v1119_v5, %v948_v6 }
 0x6c9   :  { %v1553_v8 = vpop.f32.mrf.mxu1 }
 0x6ca   :  { %1062 = vst [vmem:[#allocation19] sm:$0xff] %v949_v7 }
 0x6cb   :  { %1841 = shalt.err (!%p1838_p3)
}
 0x6cc   :  { %1074 = dma.vmem_to_hbm [thread:$0]  %s1072_s30, 128, %s2294_s19, [#allocation4]  }
 0x6cd   :  { %s1902_s27 = smov [#allocation22]  }
 0x6ce   :  { %s1091_s16 = sshll.u32 %s1902_s27, 4  ;;  %s1092_s16 = int_to_ptr.vmem [resolvable:$true] %s1091_s16 }
 0x6cf   :  { %s1850_s3 = scalar_lea.vmem %s1092_s16, 128  ;;  %p1855_p5 = scmp.lt.s32.totalorder %s1092_s16, %s1092_s16 }
 0x6d0   :  { %p1851_p4 = scmp.ne.s32.totalorder %s1092_s16, %s1850_s3  ;;  %p1856_p6 = scmp.lt.s32.totalorder %s1850_s3, %s1850_s3 }
 0x6d1   :  { %v1609_v9 = vpop.eup %1608 }
 0x6d2   :  { %v1061_v10 = vmul.f32 %v1609_v9, %v1057_v3  ;;  %p1857_p7 = por %p1856_p6, %p1855_p5 }
 0x6d4   :  { %1064 = vst [vmem:[#allocation22] sm:$0xff] %v1061_v10  ;;  %p1858_p8 = pnand %p1857_p7, %p1851_p4 }
 0x6d6   :  { %1861 = shalt.err (!%p1858_p8)
}
 0x6d7   :  { %1094 = dma.vmem_to_hbm [thread:$0]  %s1092_s16, 128, %s2296_s21, [#allocation21]  }
 0x6d8   :  { %1882 = dma.done.wait [#allocation4], 128  }
 0x6d9   :  { %1883 = vsyncadd [#allocation4], 4294967168 }
 0x6da   :  { %1884 = dma.done.wait [#allocation21], 256  }
 0x6db   :  { %1885 = vsyncadd [#allocation21], 4294967040 }
 0x6dc   :  { %1104 = vsyncpa [#allocation3], 1 }
 0x6dd   :  { %1105 = vsyncpa [#allocation6], 1 }
 0x6de   :  { %1106 = vsyncpa [#allocation9], 1 }
 0x6df   :  { %1107 = vsyncpa [#allocation12], 1 }
 0x6e0   :  { %1108 = vsyncpa [#allocation15], 1 }
 0x6e1   :  { %1109 = vsyncpa [#allocation18], 1 }
 0x6e2   :  { %1110 = vsyncpa [#allocation4], 1 }
 0x6e3   :  { %1111 = vsyncpa [#allocation21], 1 }

</bundles_post_ra>
